<compile_context>
chip_gen: v5e
topology: v5e:2x2
jax: 0.10.0
libtpu: 0.0.40
codegen_flags: <defaults>
</compile_context>

<pallas_src>
import functools

import jax
import jax.numpy as jnp
from jax import lax
from jax.experimental import pallas as pl
from jax.experimental.pallas import tpu as pltpu

LANE = 128
SUBLANE = 8
NEG_INF = -1e30


def _round_up(x, m):
    return ((x + m - 1) // m) * m


def _pad2d(a, rows, cols):
    a = jnp.asarray(a, jnp.float32)
    out = jnp.zeros((rows, cols), jnp.float32)
    return out.at[: a.shape[0], : a.shape[1]].set(a)


def _gat_conv_kernel(x_src_ref, x_dst_ref, adj_ref, w_ref, a_src_ref,
                     a_dst_ref, b_ref, o_ref, *, heads, f_head, out_valid,
                     activation):
    """One dense GATConv layer for a tile of target-node rows.

    x_src_ref : [N_pad, Fin_pad]  all (source) node features
    x_dst_ref : [TM,    Fin_pad]  this tile's (target) node features
    adj_ref   : [TM,    N_pad]    adjacency rows of the targets (>0 == edge)
    w_ref     : [Fin_pad, F_w]    per-head linear weights, heads concatenated
    a_src_ref : [heads, F_w]      att_src; head h lives in cols [h*f_head,(h+1)*f_head)
    a_dst_ref : [heads, F_w]      att_dst; same packing
    b_ref     : [1, F_out]        bias (zero in padded lanes)
    o_ref     : [TM, F_out]
    """
    x_src = x_src_ref[...]
    x_dst = x_dst_ref[...]
    w = w_ref[...]

    # Per-head linear transform, all heads at once (MXU, f32 accumulation).
    h_src = jnp.dot(x_src, w, preferred_element_type=jnp.float32)   # [N_pad, F_w]
    h_dst = jnp.dot(x_dst, w, preferred_element_type=jnp.float32)   # [TM,   F_w]

    # Per-node attention terms, one row/col per head, via A @ B^T matmuls
    # (contract on the feature axis) so no explicit transposes are needed.
    dn = (((1,), (1,)), ((), ()))
    alpha_dst = lax.dot_general(h_dst, a_dst_ref[...], dn,
                                preferred_element_type=jnp.float32)    # [TM, heads]
    alpha_src_t = lax.dot_general(a_src_ref[...], h_src, dn,
                                  preferred_element_type=jnp.float32)  # [heads, N_pad]

    edge = adj_ref[...] > 0.0                                          # [TM, N_pad]

    outs = []
    for h in range(heads):
        # e[i, j] = LeakyReLU_0.2(alpha_dst[i] + alpha_src[j]) on edges j -> i.
        e = alpha_dst[:, h:h + 1] + alpha_src_t[h:h + 1, :]            # [TM, N_pad]
        e = jnp.where(e >= 0.0, e, 0.2 * e)
        e = jnp.where(edge, e, NEG_INF)
        # Row softmax over neighbours (max-shifted; masked entries underflow to 0).
        m = jnp.max(e, axis=1, keepdims=True)
        p = jnp.exp(e - m)
        attn = p / jnp.sum(p, axis=1, keepdims=True)
        # Aggregate this head's source features.
        outs.append(jnp.dot(attn, h_src[:, h * f_head:(h + 1) * f_head],
                            preferred_element_type=jnp.float32))       # [TM, f_head]

    out = outs[0] if heads == 1 else jnp.concatenate(outs, axis=1)
    f_out = o_ref.shape[1]
    if out.shape[1] < f_out:  # lane-pad the concatenated heads if needed
        out = jnp.concatenate(
            [out, jnp.zeros((out.shape[0], f_out - out.shape[1]), out.dtype)],
            axis=1)
    out = out + b_ref[...]

    if activation == "elu":
        out = jnp.where(out > 0.0, out, jnp.exp(out) - 1.0)
    elif activation == "log_softmax":
        col = lax.broadcasted_iota(jnp.int32, out.shape, 1)
        valid = col < out_valid
        z = jnp.where(valid, out, NEG_INF)
        m = jnp.max(z, axis=1, keepdims=True)
        p = jnp.where(valid, jnp.exp(z - m), 0.0)
        lse = jnp.log(jnp.sum(p, axis=1, keepdims=True))
        out = jnp.where(valid, z - m - lse, 0.0)

    o_ref[...] = out.astype(o_ref.dtype)


def _gat_conv(x_pad, adj_pad, w_pad, a_src_pad, a_dst_pad, b_pad, *, heads,
              f_head, out_valid, activation, tile_m):
    n_pad, fin_pad = x_pad.shape
    f_w = w_pad.shape[1]
    f_out = b_pad.shape[1]
    grid = (n_pad // tile_m,)

    kernel = functools.partial(_gat_conv_kernel, heads=heads, f_head=f_head,
                               out_valid=out_valid, activation=activation)

    matmul_flops = (2 * n_pad * fin_pad * f_w + 2 * tile_m * fin_pad * f_w
                    + 2 * (n_pad + tile_m) * f_w * heads
                    + heads * 2 * tile_m * n_pad * (f_head + 3))
    cost = pl.CostEstimate(
        flops=int(grid[0] * matmul_flops),
        transcendentals=int(grid[0] * (heads * tile_m * n_pad + tile_m * f_out)),
        bytes_accessed=int(4 * (grid[0] * (x_pad.size + w_pad.size)
                                + adj_pad.size + n_pad * f_out)),
    )

    return pl.pallas_call(
        kernel,
        out_shape=jax.ShapeDtypeStruct((n_pad, f_out), jnp.float32),
        grid=grid,
        in_specs=[
            pl.BlockSpec((n_pad, fin_pad), lambda i: (0, 0)),   # x (all sources)
            pl.BlockSpec((tile_m, fin_pad), lambda i: (i, 0)),  # x (target tile)
            pl.BlockSpec((tile_m, n_pad), lambda i: (i, 0)),    # adj row tile
            pl.BlockSpec((fin_pad, f_w), lambda i: (0, 0)),     # W
            pl.BlockSpec((heads, f_w), lambda i: (0, 0)),       # att_src
            pl.BlockSpec((heads, f_w), lambda i: (0, 0)),       # att_dst
            pl.BlockSpec((1, f_out), lambda i: (0, 0)),         # bias
        ],
        out_specs=pl.BlockSpec((tile_m, f_out), lambda i: (i, 0)),
        compiler_params=pltpu.CompilerParams(
            dimension_semantics=("parallel",)),
        cost_estimate=cost,
    )(x_pad, x_pad, adj_pad, w_pad, a_src_pad, a_dst_pad, b_pad)


def gat_forward(x, adj, params):
    """x: [N, nfeat], adj: [N, N] dense adjacency mask. Returns [N, nhid2]
    log-probabilities (log_softmax over the class dim)."""
    (w1, a_src1, a_dst1, b1, w2, a_src2, a_dst2, b2) = params
    n, nfeat = x.shape
    heads = a_src1.shape[0]
    nhid = a_src1.shape[1]
    nhid2 = a_src2.shape[1]
    hf1 = heads * nhid

    # TODO(synk): F.dropout (features) and GATConv attention dropout are
    # training-time only; eval-mode (identity) dropout is implemented here.

    # GATConv adds self-loops by default.
    adj = jnp.maximum(jnp.asarray(adj, jnp.float32),
                      jnp.eye(n, dtype=jnp.float32))

    # Pad node count to the row-tile size and all feature dims to 128 lanes.
    tile_m = min(128, _round_up(n, SUBLANE))
    n_pad = _round_up(_round_up(n, SUBLANE), tile_m)
    fin_pad = _round_up(nfeat, LANE)
    hf1_pad = _round_up(hf1, LANE)
    f2_pad = _round_up(nhid2, LANE)

    x_p = _pad2d(x, n_pad, fin_pad)
    adj_p = _pad2d(adj, n_pad, n_pad)

    # ---- layer 1: heads=4, concat, fused ELU ----
    w1_p = _pad2d(w1, fin_pad, hf1_pad)
    a_src1_p = jnp.zeros((heads, hf1_pad), jnp.float32)
    a_dst1_p = jnp.zeros((heads, hf1_pad), jnp.float32)
    for h in range(heads):
        a_src1_p = a_src1_p.at[h, h * nhid:(h + 1) * nhid].set(a_src1[h])
        a_dst1_p = a_dst1_p.at[h, h * nhid:(h + 1) * nhid].set(a_dst1[h])
    b1_p = _pad2d(jnp.reshape(b1, (1, -1)), 1, hf1_pad)

    h1 = _gat_conv(x_p, adj_p, w1_p, a_src1_p, a_dst1_p, b1_p,
                   heads=heads, f_head=nhid, out_valid=hf1,
                   activation="elu", tile_m=tile_m)            # [n_pad, hf1_pad]

    # ---- layer 2: heads=1, no concat, fused masked log_softmax ----
    w2_p = _pad2d(w2, hf1_pad, f2_pad)
    a_src2_p = _pad2d(jnp.reshape(a_src2, (1, -1)), 1, f2_pad)
    a_dst2_p = _pad2d(jnp.reshape(a_dst2, (1, -1)), 1, f2_pad)
    b2_p = _pad2d(jnp.reshape(b2, (1, -1)), 1, f2_pad)

    out = _gat_conv(h1, adj_p, w2_p, a_src2_p, a_dst2_p, b2_p,
                    heads=1, f_head=f2_pad, out_valid=nhid2,
                    activation="log_softmax", tile_m=tile_m)   # [n_pad, f2_pad]

    return out[:n, :nhid2]


def reference_forward(x, adj, params):
    """Pure-JAX dense GAT reference (eval mode)."""
    (w1, a_src1, a_dst1, b1, w2, a_src2, a_dst2, b2) = params
    n = x.shape[0]
    adj = jnp.maximum(jnp.asarray(adj, jnp.float32),
                      jnp.eye(n, dtype=jnp.float32))
    mask = adj > 0.0
    hp_prec = lax.Precision.HIGHEST

    def gat_layer(h_in, w, a_src, a_dst, b, concat):
        heads, f_out = a_src.shape
        hp = jnp.dot(h_in, w, precision=hp_prec).reshape(n, heads, f_out)
        al_src = jnp.einsum("nhf,hf->nh", hp, a_src, precision=hp_prec)
        al_dst = jnp.einsum("nhf,hf->nh", hp, a_dst, precision=hp_prec)
        e = al_dst[:, None, :] + al_src[None, :, :]           # [i, j, h]
        e = jnp.where(e >= 0.0, e, 0.2 * e)
        e = jnp.where(mask[:, :, None], e, NEG_INF)
        attn = jax.nn.softmax(e, axis=1)
        out = jnp.einsum("ijh,jhf->ihf", attn, hp, precision=hp_prec)
        out = out.reshape(n, heads * f_out) if concat else out.mean(axis=1)
        return out + b

    h1 = jax.nn.elu(gat_layer(x, w1, a_src1, a_dst1, b1, True))
    h2 = gat_layer(h1, w2, a_src2, a_dst2, b2, False)
    return jax.nn.log_softmax(h2, axis=1)


if __name__ == "__main__":
    N, NFEAT, NHID, NHID2, HEADS = 32, 16, 32, 8, 4

    key = jax.random.PRNGKey(0)
    keys = jax.random.split(key, 10)

    x = jax.random.normal(keys[0], (N, NFEAT), jnp.float32)

    # Random symmetric binary adjacency; self-loops added inside the wrappers.
    a = jax.random.uniform(keys[1], (N, N), jnp.float32)
    adj = (((a + a.T) * 0.5) > 0.6).astype(jnp.float32)

    def u(k, shape, fan):
        s = 1.0 / (fan ** 0.5)
        return jax.random.uniform(k, shape, jnp.float32, -s, s)

    w1 = u(keys[2], (NFEAT, HEADS * NHID), NFEAT)
    a_src1 = u(keys[3], (HEADS, NHID), NHID)
    a_dst1 = u(keys[4], (HEADS, NHID), NHID)
    b1 = u(keys[5], (HEADS * NHID,), NHID)
    w2 = u(keys[6], (HEADS * NHID, NHID2), HEADS * NHID)
    a_src2 = u(keys[7], (1, NHID2), NHID2)
    a_dst2 = u(keys[8], (1, NHID2), NHID2)
    b2 = u(keys[9], (NHID2,), NHID2)

    params = (w1, a_src1, a_dst1, b1, w2, a_src2, a_dst2, b2)

    out = jax.block_until_ready(gat_forward(x, adj, params))
    ref = reference_forward(x, adj, params)

    assert out.shape == (N, NHID2)
    assert bool(jnp.all(jnp.isfinite(out)))
    err = float(jnp.max(jnp.abs(out - ref)))
    assert jnp.allclose(out, ref, atol=1e-3, rtol=1e-3), f"max abs err {err}"

    print("KERNEL_OK")
</pallas_src>

<mosaic_0001>
module attributes {stable_mosaic.version = 11 : i64} {
  func.func @_gat_conv_kernel(%arg0: i32, %arg1: memref<32x128xf32, #tpu.memory_space<vmem>>, %arg2: memref<32x128xf32, #tpu.memory_space<vmem>>, %arg3: memref<32x32xf32, #tpu.memory_space<vmem>>, %arg4: memref<128x128xf32, #tpu.memory_space<vmem>>, %arg5: memref<4x128xf32, #tpu.memory_space<vmem>>, %arg6: memref<4x128xf32, #tpu.memory_space<vmem>>, %arg7: memref<1x128xf32, #tpu.memory_space<vmem>>, %arg8: memref<32x128xf32, #tpu.memory_space<vmem>>) attributes {dimension_semantics = [#tpu.dimension_semantics<parallel>], iteration_bounds = array<i64: 1>, scalar_prefetch = 0 : i64, scratch_operands = 0 : i64, tpu.core_type = #tpu.core_type<tc>, window_params = [{pipeline_mode = #tpu.pipeline_mode<synchronous>, transform_indices = @transform_0, window_bounds = array<i64: 32, 128>}, {transform_indices = @transform_1, window_bounds = array<i64: 32, 128>}, {transform_indices = @transform_2, window_bounds = array<i64: 32, 32>}, {pipeline_mode = #tpu.pipeline_mode<synchronous>, transform_indices = @transform_3, window_bounds = array<i64: 128, 128>}, {pipeline_mode = #tpu.pipeline_mode<synchronous>, transform_indices = @transform_4, window_bounds = array<i64: 4, 128>}, {pipeline_mode = #tpu.pipeline_mode<synchronous>, transform_indices = @transform_5, window_bounds = array<i64: 4, 128>}, {pipeline_mode = #tpu.pipeline_mode<synchronous>, transform_indices = @transform_6, window_bounds = array<i64: 1, 128>}, {transform_indices = @transform_7, window_bounds = array<i64: 32, 128>}]} {
    %c0 = arith.constant 0 : index
    %c0_0 = arith.constant 0 : index
    %0 = vector.load %arg1[%c0, %c0_0] : memref<32x128xf32, #tpu.memory_space<vmem>>, vector<32x128xf32>
    %c0_1 = arith.constant 0 : index
    %c0_2 = arith.constant 0 : index
    %1 = vector.load %arg2[%c0_1, %c0_2] : memref<32x128xf32, #tpu.memory_space<vmem>>, vector<32x128xf32>
    %c0_3 = arith.constant 0 : index
    %c0_4 = arith.constant 0 : index
    %2 = vector.load %arg4[%c0_3, %c0_4] : memref<128x128xf32, #tpu.memory_space<vmem>>, vector<128x128xf32>
    %cst = arith.constant dense<0.000000e+00> : vector<32x128xf32>
    %3 = tpu.matmul %0, %2, %cst {dimension_numbers = #tpu.dot_dimension_numbers<[1], [0], [0], [1], [0, 0, 1, 1], [], []>} : vector<32x128xf32>, vector<128x128xf32>, vector<32x128xf32> -> vector<32x128xf32>
    %cst_5 = arith.constant dense<0.000000e+00> : vector<32x128xf32>
    %4 = tpu.matmul %1, %2, %cst_5 {dimension_numbers = #tpu.dot_dimension_numbers<[1], [0], [0], [1], [0, 0, 1, 1], [], []>} : vector<32x128xf32>, vector<128x128xf32>, vector<32x128xf32> -> vector<32x128xf32>
    %c0_6 = arith.constant 0 : index
    %c0_7 = arith.constant 0 : index
    %5 = vector.load %arg6[%c0_6, %c0_7] : memref<4x128xf32, #tpu.memory_space<vmem>>, vector<4x128xf32>
    %cst_8 = arith.constant dense<0.000000e+00> : vector<32x4xf32>
    %6 = tpu.matmul %4, %5, %cst_8 {dimension_numbers = #tpu.dot_dimension_numbers<[1], [1], [0], [0], [0, 0, 1, 0], [], []>} : vector<32x128xf32>, vector<4x128xf32>, vector<32x4xf32> -> vector<32x4xf32>
    %c0_9 = arith.constant 0 : index
    %c0_10 = arith.constant 0 : index
    %7 = vector.load %arg5[%c0_9, %c0_10] : memref<4x128xf32, #tpu.memory_space<vmem>>, vector<4x128xf32>
    %cst_11 = arith.constant dense<0.000000e+00> : vector<4x32xf32>
    %8 = tpu.matmul %7, %3, %cst_11 {dimension_numbers = #tpu.dot_dimension_numbers<[1], [1], [0], [0], [0, 0, 1, 0], [], []>} : vector<4x128xf32>, vector<32x128xf32>, vector<4x32xf32> -> vector<4x32xf32>
    %c0_12 = arith.constant 0 : index
    %c0_13 = arith.constant 0 : index
    %9 = vector.load %arg3[%c0_12, %c0_13] : memref<32x32xf32, #tpu.memory_space<vmem>>, vector<32x32xf32>
    %cst_14 = arith.constant 0.000000e+00 : f32
    %10 = vector.broadcast %cst_14 : f32 to vector<32x32xf32>
    %11 = arith.cmpf ogt, %9, %10 : vector<32x32xf32>
    %12 = vector.extract_strided_slice %6 {offsets = [0, 0], sizes = [32, 1], strides = [1, 1]} : vector<32x4xf32> to vector<32x1xf32>
    %13 = vector.extract_strided_slice %8 {offsets = [0, 0], sizes = [1, 32], strides = [1, 1]} : vector<4x32xf32> to vector<1x32xf32>
    %14 = vector.broadcast %12 : vector<32x1xf32> to vector<32x32xf32>
    %15 = vector.broadcast %13 : vector<1x32xf32> to vector<32x32xf32>
    %16 = arith.addf %14, %15 : vector<32x32xf32>
    %cst_15 = arith.constant 0.000000e+00 : f32
    %17 = vector.broadcast %cst_15 : f32 to vector<32x32xf32>
    %18 = arith.cmpf oge, %16, %17 : vector<32x32xf32>
    %cst_16 = arith.constant 2.000000e-01 : f32
    %19 = vector.broadcast %cst_16 : f32 to vector<32x32xf32>
    %20 = arith.mulf %19, %16 : vector<32x32xf32>
    %21 = arith.select %18, %16, %20 : vector<32x32xi1>, vector<32x32xf32>
    %cst_17 = arith.constant -1.000000e+30 : f32
    %22 = vector.broadcast %cst_17 : f32 to vector<32x32xf32>
    %23 = arith.select %11, %21, %22 : vector<32x32xi1>, vector<32x32xf32>
    %cst_18 = arith.constant dense<0xFF800000> : vector<32xf32>
    %24 = vector.multi_reduction <maximumf>, %23, %cst_18 [1] : vector<32x32xf32> to vector<32xf32>
    %25 = vector.shape_cast %24 : vector<32xf32> to vector<32x1xf32>
    %26 = vector.broadcast %25 : vector<32x1xf32> to vector<32x32xf32>
    %27 = arith.subf %23, %26 : vector<32x32xf32>
    %28 = math.exp %27 : vector<32x32xf32>
    %cst_19 = arith.constant dense<0.000000e+00> : vector<32xf32>
    %29 = vector.multi_reduction <add>, %28, %cst_19 [1] : vector<32x32xf32> to vector<32xf32>
    %30 = vector.shape_cast %29 : vector<32xf32> to vector<32x1xf32>
    %31 = vector.broadcast %30 : vector<32x1xf32> to vector<32x32xf32>
    %32 = arith.divf %28, %31 : vector<32x32xf32>
    %33 = vector.extract_strided_slice %3 {offsets = [0, 0], sizes = [32, 32], strides = [1, 1]} : vector<32x128xf32> to vector<32x32xf32>
    %cst_20 = arith.constant dense<0.000000e+00> : vector<32x32xf32>
    %34 = tpu.matmul %32, %33, %cst_20 {dimension_numbers = #tpu.dot_dimension_numbers<[1], [0], [0], [1], [0, 0, 1, 1], [], []>} : vector<32x32xf32>, vector<32x32xf32>, vector<32x32xf32> -> vector<32x32xf32>
    %35 = vector.extract_strided_slice %6 {offsets = [0, 1], sizes = [32, 1], strides = [1, 1]} : vector<32x4xf32> to vector<32x1xf32>
    %36 = vector.extract_strided_slice %8 {offsets = [1, 0], sizes = [1, 32], strides = [1, 1]} : vector<4x32xf32> to vector<1x32xf32>
    %37 = vector.broadcast %35 : vector<32x1xf32> to vector<32x32xf32>
    %38 = vector.broadcast %36 : vector<1x32xf32> to vector<32x32xf32>
    %39 = arith.addf %37, %38 : vector<32x32xf32>
    %cst_21 = arith.constant 0.000000e+00 : f32
    %40 = vector.broadcast %cst_21 : f32 to vector<32x32xf32>
    %41 = arith.cmpf oge, %39, %40 : vector<32x32xf32>
    %cst_22 = arith.constant 2.000000e-01 : f32
    %42 = vector.broadcast %cst_22 : f32 to vector<32x32xf32>
    %43 = arith.mulf %42, %39 : vector<32x32xf32>
    %44 = arith.select %41, %39, %43 : vector<32x32xi1>, vector<32x32xf32>
    %cst_23 = arith.constant -1.000000e+30 : f32
    %45 = vector.broadcast %cst_23 : f32 to vector<32x32xf32>
    %46 = arith.select %11, %44, %45 : vector<32x32xi1>, vector<32x32xf32>
    %cst_24 = arith.constant dense<0xFF800000> : vector<32xf32>
    %47 = vector.multi_reduction <maximumf>, %46, %cst_24 [1] : vector<32x32xf32> to vector<32xf32>
    %48 = vector.shape_cast %47 : vector<32xf32> to vector<32x1xf32>
    %49 = vector.broadcast %48 : vector<32x1xf32> to vector<32x32xf32>
    %50 = arith.subf %46, %49 : vector<32x32xf32>
    %51 = math.exp %50 : vector<32x32xf32>
    %cst_25 = arith.constant dense<0.000000e+00> : vector<32xf32>
    %52 = vector.multi_reduction <add>, %51, %cst_25 [1] : vector<32x32xf32> to vector<32xf32>
    %53 = vector.shape_cast %52 : vector<32xf32> to vector<32x1xf32>
    %54 = vector.broadcast %53 : vector<32x1xf32> to vector<32x32xf32>
    %55 = arith.divf %51, %54 : vector<32x32xf32>
    %56 = vector.extract_strided_slice %3 {offsets = [0, 32], sizes = [32, 32], strides = [1, 1]} : vector<32x128xf32> to vector<32x32xf32>
    %cst_26 = arith.constant dense<0.000000e+00> : vector<32x32xf32>
    %57 = tpu.matmul %55, %56, %cst_26 {dimension_numbers = #tpu.dot_dimension_numbers<[1], [0], [0], [1], [0, 0, 1, 1], [], []>} : vector<32x32xf32>, vector<32x32xf32>, vector<32x32xf32> -> vector<32x32xf32>
    %58 = vector.extract_strided_slice %6 {offsets = [0, 2], sizes = [32, 1], strides = [1, 1]} : vector<32x4xf32> to vector<32x1xf32>
    %59 = vector.extract_strided_slice %8 {offsets = [2, 0], sizes = [1, 32], strides = [1, 1]} : vector<4x32xf32> to vector<1x32xf32>
    %60 = vector.broadcast %58 : vector<32x1xf32> to vector<32x32xf32>
    %61 = vector.broadcast %59 : vector<1x32xf32> to vector<32x32xf32>
    %62 = arith.addf %60, %61 : vector<32x32xf32>
    %cst_27 = arith.constant 0.000000e+00 : f32
    %63 = vector.broadcast %cst_27 : f32 to vector<32x32xf32>
    %64 = arith.cmpf oge, %62, %63 : vector<32x32xf32>
    %cst_28 = arith.constant 2.000000e-01 : f32
    %65 = vector.broadcast %cst_28 : f32 to vector<32x32xf32>
    %66 = arith.mulf %65, %62 : vector<32x32xf32>
    %67 = arith.select %64, %62, %66 : vector<32x32xi1>, vector<32x32xf32>
    %cst_29 = arith.constant -1.000000e+30 : f32
    %68 = vector.broadcast %cst_29 : f32 to vector<32x32xf32>
    %69 = arith.select %11, %67, %68 : vector<32x32xi1>, vector<32x32xf32>
    %cst_30 = arith.constant dense<0xFF800000> : vector<32xf32>
    %70 = vector.multi_reduction <maximumf>, %69, %cst_30 [1] : vector<32x32xf32> to vector<32xf32>
    %71 = vector.shape_cast %70 : vector<32xf32> to vector<32x1xf32>
    %72 = vector.broadcast %71 : vector<32x1xf32> to vector<32x32xf32>
    %73 = arith.subf %69, %72 : vector<32x32xf32>
    %74 = math.exp %73 : vector<32x32xf32>
    %cst_31 = arith.constant dense<0.000000e+00> : vector<32xf32>
    %75 = vector.multi_reduction <add>, %74, %cst_31 [1] : vector<32x32xf32> to vector<32xf32>
    %76 = vector.shape_cast %75 : vector<32xf32> to vector<32x1xf32>
    %77 = vector.broadcast %76 : vector<32x1xf32> to vector<32x32xf32>
    %78 = arith.divf %74, %77 : vector<32x32xf32>
    %79 = vector.extract_strided_slice %3 {offsets = [0, 64], sizes = [32, 32], strides = [1, 1]} : vector<32x128xf32> to vector<32x32xf32>
    %cst_32 = arith.constant dense<0.000000e+00> : vector<32x32xf32>
    %80 = tpu.matmul %78, %79, %cst_32 {dimension_numbers = #tpu.dot_dimension_numbers<[1], [0], [0], [1], [0, 0, 1, 1], [], []>} : vector<32x32xf32>, vector<32x32xf32>, vector<32x32xf32> -> vector<32x32xf32>
    %81 = vector.extract_strided_slice %6 {offsets = [0, 3], sizes = [32, 1], strides = [1, 1]} : vector<32x4xf32> to vector<32x1xf32>
    %82 = vector.extract_strided_slice %8 {offsets = [3, 0], sizes = [1, 32], strides = [1, 1]} : vector<4x32xf32> to vector<1x32xf32>
    %83 = vector.broadcast %81 : vector<32x1xf32> to vector<32x32xf32>
    %84 = vector.broadcast %82 : vector<1x32xf32> to vector<32x32xf32>
    %85 = arith.addf %83, %84 : vector<32x32xf32>
    %cst_33 = arith.constant 0.000000e+00 : f32
    %86 = vector.broadcast %cst_33 : f32 to vector<32x32xf32>
    %87 = arith.cmpf oge, %85, %86 : vector<32x32xf32>
    %cst_34 = arith.constant 2.000000e-01 : f32
    %88 = vector.broadcast %cst_34 : f32 to vector<32x32xf32>
    %89 = arith.mulf %88, %85 : vector<32x32xf32>
    %90 = arith.select %87, %85, %89 : vector<32x32xi1>, vector<32x32xf32>
    %cst_35 = arith.constant -1.000000e+30 : f32
    %91 = vector.broadcast %cst_35 : f32 to vector<32x32xf32>
    %92 = arith.select %11, %90, %91 : vector<32x32xi1>, vector<32x32xf32>
    %cst_36 = arith.constant dense<0xFF800000> : vector<32xf32>
    %93 = vector.multi_reduction <maximumf>, %92, %cst_36 [1] : vector<32x32xf32> to vector<32xf32>
    %94 = vector.shape_cast %93 : vector<32xf32> to vector<32x1xf32>
    %95 = vector.broadcast %94 : vector<32x1xf32> to vector<32x32xf32>
    %96 = arith.subf %92, %95 : vector<32x32xf32>
    %97 = math.exp %96 : vector<32x32xf32>
    %cst_37 = arith.constant dense<0.000000e+00> : vector<32xf32>
    %98 = vector.multi_reduction <add>, %97, %cst_37 [1] : vector<32x32xf32> to vector<32xf32>
    %99 = vector.shape_cast %98 : vector<32xf32> to vector<32x1xf32>
    %100 = vector.broadcast %99 : vector<32x1xf32> to vector<32x32xf32>
    %101 = arith.divf %97, %100 : vector<32x32xf32>
    %102 = vector.extract_strided_slice %3 {offsets = [0, 96], sizes = [32, 32], strides = [1, 1]} : vector<32x128xf32> to vector<32x32xf32>
    %cst_38 = arith.constant dense<0.000000e+00> : vector<32x32xf32>
    %103 = tpu.matmul %101, %102, %cst_38 {dimension_numbers = #tpu.dot_dimension_numbers<[1], [0], [0], [1], [0, 0, 1, 1], [], []>} : vector<32x32xf32>, vector<32x32xf32>, vector<32x32xf32> -> vector<32x32xf32>
    %104 = tpu.concatenate %34, %57, %80, %103 in 1 : vector<32x32xf32>, vector<32x32xf32>, vector<32x32xf32>, vector<32x32xf32> -> vector<32x128xf32>
    %c0_39 = arith.constant 0 : index
    %c0_40 = arith.constant 0 : index
    %105 = vector.load %arg7[%c0_39, %c0_40] : memref<1x128xf32, #tpu.memory_space<vmem>>, vector<1x128xf32>
    %106 = vector.broadcast %105 : vector<1x128xf32> to vector<32x128xf32>
    %107 = arith.addf %104, %106 : vector<32x128xf32>
    %cst_41 = arith.constant 0.000000e+00 : f32
    %108 = vector.broadcast %cst_41 : f32 to vector<32x128xf32>
    %109 = arith.cmpf ogt, %107, %108 : vector<32x128xf32>
    %110 = math.exp %107 : vector<32x128xf32>
    %cst_42 = arith.constant 1.000000e+00 : f32
    %111 = vector.broadcast %cst_42 : f32 to vector<32x128xf32>
    %112 = arith.subf %110, %111 : vector<32x128xf32>
    %113 = arith.select %109, %107, %112 : vector<32x128xi1>, vector<32x128xf32>
    %c0_43 = arith.constant 0 : index
    %c0_44 = arith.constant 0 : index
    %114 = vector.load %arg8[%c0_43, %c0_44] : memref<32x128xf32, #tpu.memory_space<vmem>>, vector<32x128xf32>
    tpu.vector_store %arg8[%c0_43, %c0_44], %113 {strides = array<i32>} : memref<32x128xf32, #tpu.memory_space<vmem>>, vector<32x128xf32>,
    return
  }
  func.func @transform_0(%arg0: i32) -> (i32, i32) {
    %c0_i32 = arith.constant 0 : i32
    %c0_i32_0 = arith.constant 0 : i32
    %c0_i32_1 = arith.constant 0 : i32
    return %c0_i32, %c0_i32_0 : i32, i32
  }
  func.func @transform_1(%arg0: i32) -> (i32, i32) {
    %c0_i32 = arith.constant 0 : i32
    %c0_i32_0 = arith.constant 0 : i32
    return %arg0, %c0_i32 : i32, i32
  }
  func.func @transform_2(%arg0: i32) -> (i32, i32) {
    %c0_i32 = arith.constant 0 : i32
    %c0_i32_0 = arith.constant 0 : i32
    return %arg0, %c0_i32 : i32, i32
  }
  func.func @transform_3(%arg0: i32) -> (i32, i32) {
    %c0_i32 = arith.constant 0 : i32
    %c0_i32_0 = arith.constant 0 : i32
    %c0_i32_1 = arith.constant 0 : i32
    return %c0_i32, %c0_i32_0 : i32, i32
  }
  func.func @transform_4(%arg0: i32) -> (i32, i32) {
    %c0_i32 = arith.constant 0 : i32
    %c0_i32_0 = arith.constant 0 : i32
    %c0_i32_1 = arith.constant 0 : i32
    return %c0_i32, %c0_i32_0 : i32, i32
  }
  func.func @transform_5(%arg0: i32) -> (i32, i32) {
    %c0_i32 = arith.constant 0 : i32
    %c0_i32_0 = arith.constant 0 : i32
    %c0_i32_1 = arith.constant 0 : i32
    return %c0_i32, %c0_i32_0 : i32, i32
  }
  func.func @transform_6(%arg0: i32) -> (i32, i32) {
    %c0_i32 = arith.constant 0 : i32
    %c0_i32_0 = arith.constant 0 : i32
    %c0_i32_1 = arith.constant 0 : i32
    return %c0_i32, %c0_i32_0 : i32, i32
  }
  func.func @transform_7(%arg0: i32) -> (i32, i32) {
    %c0_i32 = arith.constant 0 : i32
    %c0_i32_0 = arith.constant 0 : i32
    return %arg0, %c0_i32 : i32, i32
  }
}

</mosaic_0001>

<bundles_post_ra>
// kernel: tpu_custom_call.1
= control target key start
LH: loop header
LB: loop body
LE: loop exit
PB: predicated region body
PF: predicated region fallthrough
CT: control target
= control target key end

     0   :  { %12 = vsyncpa [#allocation3], 0  ;;  %s1922_s0 = inlined_call_operand.hbm [shape: f32[32,128], index: 0, kind: input, shape index: {}]   ;;  %s1923_s1 = inlined_call_operand.hbm [shape: f32[32,128], index: 1, kind: input, shape index: {}]   ;;  %s1924_s2 = inlined_call_operand.hbm [shape: f32[32,32], index: 2, kind: input, shape index: {}]   ;;  %s1925_s3 = inlined_call_operand.hbm [shape: f32[128,128], index: 3, kind: input, shape index: {}]   ;;  %s1926_s4 = inlined_call_operand.hbm [shape: f32[4,128], index: 4, kind: input, shape index: {}]   ;;  %s1927_s5 = inlined_call_operand.vmem [shape: f32[4,128], index: 5, kind: input, shape index: {}]   ;;  %s1928_s6 = inlined_call_operand.vmem [shape: f32[1,128], index: 6, kind: input, shape index: {}]   ;;  %s1929_s7 = inlined_call_operand.hbm [shape: f32[32,128], index: 7, kind: output, shape index: {}]  }
   0x1   :  { %13 = vsyncpa [#allocation6], 0 }
   0x2   :  { %14 = vsyncpa [#allocation9], 0 }
   0x3   :  { %15 = vsyncpa [#allocation4], 0  ;;  %s33_s26 = sshll.u32 %s1923_s1, 4  ;;  %s1408_s27 = smov [#allocation5]   ;;  %s34_s26 = int_to_ptr.hbm [resolvable:$true] %s33_s26 }
   0x4   :  { %s35_s28 = sshll.u32 %s1408_s27, 4  ;;  %s59_s8 = sshll.u32 %s1925_s3, 4  ;;  %s36_s28 = int_to_ptr.vmem [resolvable:$true] %s35_s28  ;;  %s60_s8 = int_to_ptr.hbm [resolvable:$true] %s59_s8 }
   0x5   :  { %s1409_s9 = smov 128   ;;  %s1410_s10 = smov 8  }
   0x6   :  { %41 = dma.hbm_to_vmem [thread:$0]  %s34_s26, 512, %s36_s28, [#allocation6], %s1409_s9, %s1409_s9, %s1410_s10  }
   0x7   :  { %s1411_s11 = smov [#allocation8]   ;;  %s20_s1 = sshll.u32 %s1922_s0, 4  ;;  %s21_s1 = int_to_ptr.hbm [resolvable:$true] %s20_s1 }
   0x8   :  { %s61_s12 = sshll.u32 %s1411_s11, 4  ;;  %s46_s16 = sshll.u32 %s1924_s2, 4  ;;  %s62_s12 = int_to_ptr.vmem [resolvable:$true] %s61_s12  ;;  %s47_s16 = int_to_ptr.hbm [resolvable:$true] %s46_s16 }
   0x9   :  { %67 = dma.hbm_to_vmem [thread:$0]  %s60_s8, 2048, %s62_s12, [#allocation9], %s1409_s9, %s1409_s9, %s1410_s10  }
   0xa   :  { %s1412_s17 = smov [#allocation2]   ;;  %s1413_s19 = smov [#allocation7]  }
   0xb   :  { %s22_s18 = sshll.u32 %s1412_s17, 4  ;;  %s48_s0 = sshll.u32 %s1413_s19, 4  ;;  %s23_s18 = int_to_ptr.vmem [resolvable:$true] %s22_s18  ;;  %s49_s0 = int_to_ptr.vmem [resolvable:$true] %s48_s0 }
   0xc   :  { %28 = dma.hbm_to_vmem [thread:$0]  %s21_s1, 512, %s23_s18, [#allocation3], %s1409_s9, %s1409_s9, %s1410_s10  }
   0xd   :  { %s73_s22 = sshll.u32 %s1926_s4, 4  ;;  %s1414_s2 = smov [#allocation10]   ;;  %s74_s22 = int_to_ptr.hbm [resolvable:$true] %s73_s22 }
   0xe   :  { %54 = dma.hbm_to_vmem [thread:$0]  %s47_s16, 512, %s49_s0, [#allocation6], %s1409_s9, %s1409_s9, %s1410_s10  }
   0xf   :  { %s75_s23 = sshll.u32 %s1414_s2, 4  ;;  %s76_s23 = int_to_ptr.vmem [resolvable:$true] %s75_s23 }
  0x10   :  { %78 = dma.hbm_to_vmem [thread:$0]  %s74_s22, 64, %s76_s23, [#allocation9]  }
  0x11   :  { %1400 = dma.done.wait [#allocation3], 512  }
  0x12   :  { %1401 = vsyncadd [#allocation3], 4294966784 }
  0x13   :  { %1402 = dma.done.wait [#allocation6], 1024  }
  0x14   :  { %1403 = vsyncadd [#allocation6], 4294966272 }
  0x15   :  { %1404 = dma.done.wait [#allocation9], 2112  }
  0x16   :  { %1405 = vsyncadd [#allocation9], 4294965184  ;;  %v126_v0 = vld [vmem:[#allocation8 + $0x78] sm:$0xff]  ;;  %v125_v1 = vld [vmem:[#allocation8 + $0x70] sm:$0xff]  ;;  %v1415_v29 = vmov 1   ;;  %v1416_v30 = vmov 0  }
  0x17   :  { %156 = vmatpush.msra.mxu1 %v126_v0  ;;  %127 = vmatpush.msra.mxu0 %v126_v0  ;;  %v124_v2 = vld [vmem:[#allocation8 + $0x68] sm:$0xff]  ;;  %v123_v3 = vld [vmem:[#allocation8 + $0x60] sm:$0xff]  ;;  %v122_v4 = vld [vmem:[#allocation8 + $0x58] sm:$0xff]  ;;  %v1418_v38 = vmov 2   ;;  %v1419_v44 = vmov 3   ;;  %vm285_vm2 = vcmask 261120  }
  0x18   :  { %v121_v5 = vld [vmem:[#allocation8 + $0x50] sm:$0xff]  ;;  %v120_v6 = vld [vmem:[#allocation8 + $0x48] sm:$0xff]  ;;  %v119_v7 = vld [vmem:[#allocation8 + $0x40] sm:$0xff]  ;;  %1145 = vset.pattern.permute.xlu2 %v1415_v29  ;;  %1144 = vset.pattern.permute.xlu0 %v1416_v30  ;;  %s1420_s25 = smov 64   ;;  %s1421_s26 = smov 32  }
  0x19   :  { %157 = vmatpush.msra.mxu1 %v125_v1  ;;  %128 = vmatpush.msra.mxu0 %v125_v1  ;;  %v118_v8 = vld [vmem:[#allocation8 + $0x38] sm:$0xff]  ;;  %v117_v9 = vld [vmem:[#allocation8 + $0x30] sm:$0xff]  ;;  %v116_v10 = vld [vmem:[#allocation8 + $0x28] sm:$0xff]  ;;  %s1085_s11 = sshll.u32 %s1929_s7, 4  ;;  %s1086_s11 = int_to_ptr.hbm [resolvable:$true] %s1085_s11 }
  0x1a   :  { %v115_v11 = vld [vmem:[#allocation8 + $0x20] sm:$0xff]  ;;  %v114_v12 = vld [vmem:[#allocation8 + $0x18] sm:$0xff]  ;;  %v113_v13 = vld [vmem:[#allocation8 + $0x10] sm:$0xff]  ;;  %1149 = vset.pattern.permute.xlu1 %v1418_v38 }
  0x1b   :  { %158 = vmatpush.msra.mxu1 %v124_v2  ;;  %129 = vmatpush.msra.mxu0 %v124_v2  ;;  %v185_v14 = vld [vmem:[%s1927_s5] sm:$0xf]  ;;  %v112_v15 = vld [vmem:[#allocation8 + $0x8] sm:$0xff]  ;;  %v109_v21 = vld [vmem:[#allocation5 + $0x10] sm:$0xff]  ;;  %s1417_s5 = smov 96  }
  0x1c   :  { %201 = vmatpush.xpose.msra.mxu2 %v185_v14  ;;  %v111_v16 = vld [vmem:[#allocation8] sm:$0xff]  ;;  %v108_v19 = vld [vmem:[#allocation5 + $0x8] sm:$0xff]  ;;  %v105_v22 = vld [vmem:[#allocation2 + $0x10] sm:$0xff] }
  0x1d   :  { %159 = vmatpush.msra.mxu1 %v123_v3  ;;  %130 = vmatpush.msra.mxu0 %v123_v3  ;;  %v107_v17 = vld [vmem:[#allocation5] sm:$0xff]  ;;  %v104_v20 = vld [vmem:[#allocation2 + $0x8] sm:$0xff]  ;;  %v110_v23 = vld [vmem:[#allocation5 + $0x18] sm:$0xff] }
  0x1e   :  { %v103_v18 = vld [vmem:[#allocation2] sm:$0xff]  ;;  %v106_v24 = vld [vmem:[#allocation2 + $0x18] sm:$0xff] }
  0x1f   :  { %160 = vmatpush.msra.mxu1 %v122_v4  ;;  %131 = vmatpush.msra.mxu0 %v122_v4  ;;  %v215_v36 = vld [vmem:[#allocation10] sm:$0xf] }
  0x20   :  { %v236_v50 = vld [vmem:[#allocation7] sm:$0xff] }
  0x21   :  { %161 = vmatpush.msra.mxu1 %v121_v5  ;;  %132 = vmatpush.msra.mxu0 %v121_v5  ;;  %vm240_vm0 = vcmp.gt.f32.partialorder %v236_v50, 0.0 }
  0x23   :  { %162 = vmatpush.msra.mxu1 %v120_v6  ;;  %133 = vmatpush.msra.mxu0 %v120_v6 }
  0x25   :  { %163 = vmatpush.msra.mxu1 %v119_v7  ;;  %134 = vmatpush.msra.mxu0 %v119_v7 }
  0x27   :  { %164 = vmatpush.msra.mxu1 %v118_v8  ;;  %135 = vmatpush.msra.mxu0 %v118_v8 }
  0x29   :  { %165 = vmatpush.msra.mxu1 %v117_v9  ;;  %136 = vmatpush.msra.mxu0 %v117_v9 }
  0x2b   :  { %166 = vmatpush.msra.mxu1 %v116_v10  ;;  %137 = vmatpush.msra.mxu0 %v116_v10 }
  0x2d   :  { %167 = vmatpush.msra.mxu1 %v115_v11  ;;  %138 = vmatpush.msra.mxu0 %v115_v11 }
  0x2f   :  { %168 = vmatpush.msra.mxu1 %v114_v12  ;;  %139 = vmatpush.msra.mxu0 %v114_v12 }
  0x31   :  { %169 = vmatpush.msra.mxu1 %v113_v13  ;;  %140 = vmatpush.msra.mxu0 %v113_v13 }
  0x33   :  { %170 = vmatpush.msra.mxu1 %v112_v15  ;;  %141 = vmatpush.msra.mxu0 %v112_v15 }
  0x35   :  { %171 = vmatpush.msra.mxu1 %v111_v16  ;;  %142 = vmatpush.msra.mxu0 %v111_v16  ;;  %v237_v16 = vld [vmem:[#allocation7 + $0x8] sm:$0xff] }
  0x36   :  { %172 = vmatmul.f32.vlgmr.msra.gmra.mxu1 %v107_v17  ;;  %143 = vmatmul.f32.vlgmr.msra.gmra.mxu0 %v103_v18  ;;  %vm241_vm7 = vcmp.gt.f32.partialorder %v237_v16, 0.0 }
  0x3e   :  { %175 = vmatmul.f32.gmra.mxu1 %v108_v19  ;;  %146 = vmatmul.f32.gmra.mxu0 %v104_v20 }
  0x46   :  { %178 = vmatmul.f32.gmra.mxu1 %v109_v21  ;;  %149 = vmatmul.f32.gmra.mxu0 %v105_v22 }
  0x4e   :  { %181 = vmatmul.f32.gmra.mxu1 %v110_v23  ;;  %152 = vmatmul.f32.gmra.mxu0 %v106_v24 }
  0xb3   :  { %v173_v25 = vpop.f32.mrf.mxu1  ;;  %v144_v26 = vpop.f32.mrf.mxu0 }
  0xb4   :  { %202 = vmatmul.f32.vlgmr.msra.gmra.mxu2 %v173_v25 }
  0xbb   :  { %v176_v27 = vpop.f32.mrf.mxu1  ;;  %v147_v28 = vpop.f32.mrf.mxu0 }
  0xbc   :  { %205 = vmatmul.f32.gmra.mxu2 %v176_v27  ;;  %v1497_v37 = vpack.i.bf16 %v144_v26, %v147_v28 }
  0xc3   :  { %v179_v31 = vpop.f32.mrf.mxu1  ;;  %v150_v32 = vpop.f32.mrf.mxu0 }
  0xc4   :  { %208 = vmatmul.f32.gmra.mxu2 %v179_v31 }
  0xcb   :  { %v182_v33 = vpop.f32.mrf.mxu1  ;;  %v153_v34 = vpop.f32.mrf.mxu0 }
  0xcc   :  { %211 = vmatmul.f32.gmra.mxu2 %v182_v33  ;;  %406 = vmatpush.msra.mxu3 %v153_v34  ;;  %v1493_v35 = vpack.i.bf16 %v150_v32, %v153_v34 }
  0xcd   :  { %228 = vmatpush.xpose.msrb.mxu2 %v153_v34 }
  0xce   :  { %407 = vmatpush.msra.mxu3 %v150_v32  ;;  %1140 = vrot.lane.b32.xlu1 %v1493_v35, %s1417_s5 }
  0xd0   :  { %408 = vmatpush.msra.mxu3 %v147_v28 }
  0xd1   :  { %229 = vmatpush.xpose.msrb.mxu2 %v150_v32 }
  0xd2   :  { %409 = vmatpush.msra.mxu3 %v144_v26 }
  0xd5   :  { %230 = vmatpush.xpose.msrb.mxu2 %v147_v28 }
  0xd9   :  { %231 = vmatpush.xpose.msrb.mxu2 %v144_v26 }
  0xdc   :  { %232 = vmatmul.f32.vlgmr.msrb.gmra.mxu2 %v215_v36 }
 0x137   :  { %v203_v39 = vpop.f32.mrf.mxu2 }
 0x138   :  { %424 = vperm.xlu2 %1145, %v203_v39   ;;  %246 = vperm.xlu0 %1144, %v203_v39  }
 0x13f   :  { %v206_v40 = vpop.f32.mrf.mxu2 }
 0x140   :  { %1146 = vset.pattern.permute.xlu2 %v1418_v38  ;;  %251 = vperm.xlu0 %1144, %v206_v40   ;;  %v1141_v41 = vpop.permute.xlu1 %1140 }
 0x141   :  { %618 = vperm.xlu1 %1149, %v206_v40   ;;  %614 = vperm.xlu2 %1146, %v203_v39   ;;  %v1142_v43 = vunpack.i.l.bf16 %v1141_v41  ;;  %v1143_v45 = vunpack.i.h.bf16 %v1141_v41 }
 0x143   :  { %596 = vmatpush.msra.mxu2 %v1142_v43 }
 0x145   :  { %597 = vmatpush.msra.mxu2 %v1143_v45 }
 0x147   :  { %v209_v42 = vpop.f32.mrf.mxu2 }
 0x148   :  { %1148 = vset.pattern.permute.xlu0 %v1415_v29 }
 0x149   :  { %1150 = vset.pattern.permute.xlu1 %v1416_v30  ;;  %1147 = vset.pattern.permute.xlu2 %v1419_v44 }
 0x14a   :  { %428 = vperm.xlu0 %1148, %v206_v40   ;;  %256 = vperm.xlu1 %1150, %v209_v42  }
 0x14b   :  { %800 = vperm.xlu2 %1147, %v203_v39   ;;  %v238_v39 = vld [vmem:[#allocation7 + $0x10] sm:$0xff] }
 0x14c   :  { %vm242_vm12 = vcmp.gt.f32.partialorder %v238_v39, 0.0 }
 0x14f   :  { %v212_v46 = vpop.f32.mrf.mxu2 }
 0x152   :  { %1152 = vset.pattern.permute.xlu0 %v1418_v38  ;;  %1151 = vset.pattern.permute.xlu1 %v1415_v29 }
 0x153   :  { %804 = vperm.xlu2 %1147, %v206_v40   ;;  %622 = vperm.xlu0 %1152, %v209_v42  }
 0x154   :  { %432 = vperm.xlu1 %1151, %v209_v42  }
 0x15b   :  { %1153 = vset.pattern.permute.xlu0 %v1419_v44  ;;  %812 = vperm.xlu2 %1147, %v212_v46  }
 0x15c   :  { %1154 = vset.pattern.permute.xlu1 %v1416_v30  ;;  %808 = vperm.xlu0 %1153, %v209_v42  }
 0x15d   :  { %261 = vperm.xlu1 %1154, %v212_v46  }
 0x15f   :  { %v233_v47 = vpop.f32.mrf.mxu2 }
 0x160   :  { %v1499_v48 = vperm.slane %v233_v47, 1  ;;  %v1502_v54 = vperm.slane %v233_v47, 2  ;;  %v1513_v62 = vperm.slane %v233_v47, 3  ;;  %v1518_v2 = vperm.slane %v233_v47, 0 }
 0x164   :  { %1155 = vset.pattern.permute.xlu0 %v1415_v29 }
 0x165   :  { %1156 = vset.pattern.permute.xlu1 %v1418_v38  ;;  %436 = vperm.xlu0 %1155, %v212_v46  }
 0x166   :  { %626 = vperm.xlu1 %1156, %v212_v46  }
 0x16d   :  { %1182 = vset.pattern.permute.xlu0 %v1419_v44 }
 0x192   :  { %v425_v49 = vpop.permute.xlu2 %424 }
 0x193   :  { %v440_v51 = vadd.f32 %v1499_v48, %v425_v49 }
 0x195   :  { %v448_v52 = vmul.f32 0.2, %v440_v51  ;;  %vm444_vm1 = vcmp.ge.f32.partialorder %v440_v51, 0.0 }
 0x197   :  { %v452_v53 = vsel %vm444_vm1, %v440_v51, %v448_v52 }
 0x198   :  { %v1505_v55 = vsel %vm240_vm0, %v452_v53, -1e+30 }
 0x199   :  { %v460_v56 = vsel %vm285_vm2, %v1505_v55, -inf }
 0x19a   :  { %461 = vmax.xlane.f32.xlu1 %v460_v56 }
 0x19b   :  { %v615_v57 = vpop.permute.xlu2 %614 }
 0x19c   :  { %v630_v58 = vadd.f32 %v1502_v54, %v615_v57 }
 0x19e   :  { %v638_v59 = vmul.f32 0.2, %v630_v58  ;;  %vm634_vm3 = vcmp.ge.f32.partialorder %v630_v58, 0.0 }
 0x1a0   :  { %v642_v60 = vsel %vm634_vm3, %v630_v58, %v638_v59 }
 0x1a1   :  { %v1511_v61 = vsel %vm240_vm0, %v642_v60, -1e+30 }
 0x1a2   :  { %v650_v63 = vsel %vm285_vm2, %v1511_v61, -inf }
 0x1a3   :  { %651 = vmax.xlane.f32.xlu0 %v650_v63 }
 0x1a5   :  { %v801_v0 = vpop.permute.xlu2 %800 }
 0x1a6   :  { %v816_v1 = vadd.f32 %v1513_v62, %v801_v0 }
 0x1a8   :  { %v824_v3 = vmul.f32 0.2, %v816_v1  ;;  %vm820_vm4 = vcmp.ge.f32.partialorder %v816_v1, 0.0 }
 0x1aa   :  { %v247_v4 = vpop.permute.xlu0 %246  ;;  %v828_v5 = vsel %vm820_vm4, %v816_v1, %v824_v3  ;;  %v239_v1 = vld [vmem:[#allocation7 + $0x18] sm:$0xff] }
 0x1ab   :  { %v265_v6 = vadd.f32 %v1518_v2, %v247_v4  ;;  %v1522_v7 = vsel %vm240_vm0, %v828_v5, -1e+30  ;;  %vm243_vm1 = vcmp.gt.f32.partialorder %v239_v1, 0.0 }
 0x1ac   :  { %v836_v8 = vsel %vm285_vm2, %v1522_v7, -inf }
 0x1ad   :  { %v273_v9 = vmul.f32 0.2, %v265_v6  ;;  %837 = vmax.xlane.f32.xlu1 %v836_v8  ;;  %vm269_vm5 = vcmp.ge.f32.partialorder %v265_v6, 0.0  ;;  %v805_v28 = vpop.permute.xlu2 %804 }
 0x1ae   :  { %v817_v31 = vadd.f32 %v1513_v62, %v805_v28 }
 0x1af   :  { %v277_v10 = vsel %vm269_vm5, %v265_v6, %v273_v9 }
 0x1b0   :  { %v1527_v11 = vsel %vm240_vm0, %v277_v10, -1e+30  ;;  %v825_v42 = vmul.f32 0.2, %v817_v31  ;;  %vm821_vm13 = vcmp.ge.f32.partialorder %v817_v31, 0.0 }
 0x1b1   :  { %v286_v12 = vsel %vm285_vm2, %v1527_v11, -inf }
 0x1b2   :  { %v252_v13 = vpop.permute.xlu0 %251  ;;  %287 = vmax.xlane.f32.xlu2 %v286_v12  ;;  %v829_v53 = vsel %vm821_vm13, %v817_v31, %v825_v42 }
 0x1b3   :  { %v266_v14 = vadd.f32 %v1518_v2, %v252_v13  ;;  %v619_v15 = vpop.permute.xlu1 %618  ;;  %v1566_v60 = vsel %vm241_vm7, %v829_v53, -1e+30 }
 0x1b4   :  { %v631_v23 = vadd.f32 %v1502_v54, %v619_v15  ;;  %v839_v4 = vsel %vm285_vm2, %v1566_v60, -inf }
 0x1b5   :  { %v274_v17 = vmul.f32 0.2, %v266_v14  ;;  %vm270_vm6 = vcmp.ge.f32.partialorder %v266_v14, 0.0 }
 0x1b6   :  { %v639_v26 = vmul.f32 0.2, %v631_v23  ;;  %vm635_vm9 = vcmp.ge.f32.partialorder %v631_v23, 0.0 }
 0x1b7   :  { %v278_v18 = vsel %vm270_vm6, %v266_v14, %v274_v17 }
 0x1b8   :  { %v1533_v19 = vsel %vm241_vm7, %v278_v18, -1e+30  ;;  %v643_v33 = vsel %vm635_vm9, %v631_v23, %v639_v26 }
 0x1b9   :  { %v289_v20 = vsel %vm285_vm2, %v1533_v19, -inf  ;;  %v1548_v41 = vsel %vm241_vm7, %v643_v33, -1e+30 }
 0x1ba   :  { %290 = vmax.xlane.f32.xlu1 %v289_v20  ;;  %v653_v45 = vsel %vm285_vm2, %v1548_v41, -inf }
 0x1bc   :  { %v429_v21 = vpop.permute.xlu0 %428  ;;  %v257_v22 = vpop.permute.xlu1 %256 }
 0x1bd   :  { %v441_v24 = vadd.f32 %v1499_v48, %v429_v21  ;;  %v267_v51 = vadd.f32 %v1518_v2, %v257_v22  ;;  %v813_v22 = vpop.permute.xlu2 %812 }
 0x1bf   :  { %v449_v25 = vmul.f32 0.2, %v441_v24  ;;  %vm445_vm8 = vcmp.ge.f32.partialorder %v441_v24, 0.0  ;;  %v275_v63 = vmul.f32 0.2, %v267_v51  ;;  %vm271_vm0 = vcmp.ge.f32.partialorder %v267_v51, 0.0 }
 0x1c1   :  { %v453_v27 = vsel %vm445_vm8, %v441_v24, %v449_v25  ;;  %v279_v9 = vsel %vm271_vm0, %v267_v51, %v275_v63  ;;  %v819_v24 = vadd.f32 %v1513_v62, %v813_v22 }
 0x1c2   :  { %v1540_v29 = vsel %vm241_vm7, %v453_v27, -1e+30  ;;  %v1580_v15 = vsel %vm242_vm12, %v279_v9, -1e+30 }
 0x1c3   :  { %v463_v30 = vsel %vm285_vm2, %v1540_v29, -inf  ;;  %v292_v18 = vsel %vm285_vm2, %v1580_v15, -inf  ;;  %v827_v26 = vmul.f32 0.2, %v819_v24  ;;  %vm823_vm5 = vcmp.ge.f32.partialorder %v819_v24, 0.0 }
 0x1c4   :  { %464 = vmax.xlane.f32.xlu0 %v463_v30 }
 0x1c5   :  { %v623_v32 = vpop.permute.xlu0 %622  ;;  %v831_v28 = vsel %vm823_vm5, %v819_v24, %v827_v26 }
 0x1c6   :  { %v632_v34 = vadd.f32 %v1502_v54, %v623_v32  ;;  %v433_v36 = vpop.permute.xlu1 %432  ;;  %v1599_v30 = vsel %vm243_vm1, %v831_v28, -1e+30 }
 0x1c7   :  { %v442_v38 = vadd.f32 %v1499_v48, %v433_v36 }
 0x1c8   :  { %v640_v40 = vmul.f32 0.2, %v632_v34  ;;  %vm636_vm10 = vcmp.ge.f32.partialorder %v632_v34, 0.0 }
 0x1c9   :  { %v450_v43 = vmul.f32 0.2, %v442_v38  ;;  %vm446_vm11 = vcmp.ge.f32.partialorder %v442_v38, 0.0 }
 0x1ca   :  { %v644_v44 = vsel %vm636_vm10, %v632_v34, %v640_v40 }
 0x1cb   :  { %v1553_v46 = vsel %vm242_vm12, %v644_v44, -1e+30  ;;  %v454_v47 = vsel %vm446_vm11, %v442_v38, %v450_v43 }
 0x1cc   :  { %654 = vmax.xlane.f32.xlu0 %v653_v45  ;;  %v656_v49 = vsel %vm285_vm2, %v1553_v46, -inf  ;;  %v1558_v50 = vsel %vm242_vm12, %v454_v47, -1e+30 }
 0x1cd   :  { %657 = vmax.xlane.f32.xlu1 %v656_v49  ;;  %v466_v52 = vsel %vm285_vm2, %v1558_v50, -inf }
 0x1ce   :  { %467 = vmax.xlane.f32.xlu2 %v466_v52  ;;  %v809_v56 = vpop.permute.xlu0 %808 }
 0x1cf   :  { %v818_v57 = vadd.f32 %v1513_v62, %v809_v56  ;;  %v262_v58 = vpop.permute.xlu1 %261  ;;  %v845_v62 = vsel %vm285_vm2, %v1599_v30, -inf }
 0x1d0   :  { %v268_v59 = vadd.f32 %v1518_v2, %v262_v58 }
 0x1d1   :  { %v826_v0 = vmul.f32 0.2, %v818_v57  ;;  %vm822_vm14 = vcmp.ge.f32.partialorder %v818_v57, 0.0 }
 0x1d2   :  { %v276_v3 = vmul.f32 0.2, %v268_v59  ;;  %vm272_vm15 = vcmp.ge.f32.partialorder %v268_v59, 0.0 }
 0x1d3   :  { %v830_v5 = vsel %vm822_vm14, %v818_v57, %v826_v0 }
 0x1d4   :  { %840 = vmax.xlane.f32.xlu0 %v839_v4  ;;  %v280_v6 = vsel %vm272_vm15, %v268_v59, %v276_v3  ;;  %v1571_v8 = vsel %vm242_vm12, %v830_v5, -1e+30 }
 0x1d5   :  { %v1574_v2 = vsel %vm243_vm1, %v280_v6, -1e+30  ;;  %v842_v34 = vsel %vm285_vm2, %v1571_v8, -inf }
 0x1d6   :  { %v295_v10 = vsel %vm285_vm2, %v1574_v2, -inf }
 0x1d7   :  { %296 = vmax.xlane.f32.xlu2 %v295_v10  ;;  %v437_v12 = vpop.permute.xlu0 %436 }
 0x1d8   :  { %v443_v13 = vadd.f32 %v1499_v48, %v437_v12  ;;  %v627_v14 = vpop.permute.xlu1 %626 }
 0x1d9   :  { %v633_v16 = vadd.f32 %v1502_v54, %v627_v14 }
 0x1da   :  { %v451_v17 = vmul.f32 0.2, %v443_v13  ;;  %vm447_vm3 = vcmp.ge.f32.partialorder %v443_v13, 0.0 }
 0x1db   :  { %v641_v20 = vmul.f32 0.2, %v633_v16  ;;  %vm637_vm4 = vcmp.ge.f32.partialorder %v633_v16, 0.0 }
 0x1dc   :  { %293 = vmax.xlane.f32.xlu0 %v292_v18  ;;  %v455_v21 = vsel %vm447_vm3, %v443_v13, %v451_v17 }
 0x1dd   :  { %v1586_v23 = vsel %vm243_vm1, %v455_v21, -1e+30  ;;  %v645_v54 = vsel %vm637_vm4, %v633_v16, %v641_v20 }
 0x1de   :  { %v469_v48 = vsel %vm285_vm2, %v1586_v23, -inf  ;;  %v1592_v25 = vsel %vm243_vm1, %v645_v54, -1e+30 }
 0x1df   :  { %470 = vmax.xlane.f32.xlu2 %v469_v48  ;;  %v659_v27 = vsel %vm285_vm2, %v1592_v25, -inf }
 0x1e6   :  { %1168 = vrot.lane.b32.xlu1 %v1497_v37, %s1420_s25 }
 0x1e7   :  { %660 = vmax.xlane.f32.xlu2 %v659_v27 }
 0x1ef   :  { %846 = vmax.xlane.f32.xlu2 %v845_v62 }
 0x1f0   :  { %1158 = vrot.lane.b32.xlu0 %v1493_v35, %s1420_s25 }
 0x207   :  { %1163 = vrot.lane.b32.xlu2 %v1497_v37, %s1417_s5 }
 0x20d   :  { %v462_v36 = vpop.xlane.xlu1 %461 }
 0x20e   :  { %v472_v38 = vsub.f32 %v1505_v55, %v462_v36 }
 0x210   :  { %v476_v40 = vmul.f32 1.442695, %v472_v38 }
 0x216   :  { %v652_v31 = vpop.xlane.xlu0 %651 }
 0x217   :  { %v662_v32 = vsub.f32 %v1511_v61, %v652_v31 }
 0x219   :  { %v666_v33 = vmul.f32 1.442695, %v662_v32 }
 0x21a   :  { %843 = vmax.xlane.f32.xlu0 %v842_v34 }
 0x21b   :  { %1184 = vpow2.f32 %v666_v33 }
 0x21c   :  { %1186 = vpow2.f32 %v476_v40 }
 0x220   :  { %v838_v43 = vpop.xlane.xlu1 %837 }
 0x221   :  { %v1611_v39 = vpop.eup %1184 }
 0x222   :  { %v674_v42 = vsel %vm285_vm2, %v1611_v39, 0.0  ;;  %v1616_v47 = vpop.eup %1186 }
 0x223   :  { %675 = vadd.xlane.f32.xlu1 %v674_v42  ;;  %v484_v55 = vsel %vm285_vm2, %v1616_v47, 0.0 }
 0x225   :  { %v288_v44 = vpop.xlane.xlu2 %287 }
 0x226   :  { %v298_v61 = vsub.f32 %v1527_v11, %v288_v44 }
 0x228   :  { %v302_v45 = vmul.f32 1.442695, %v298_v61 }
 0x22a   :  { %1188 = vpow2.f32 %v302_v45 }
 0x22d   :  { %v291_v49 = vpop.xlane.xlu1 %290 }
 0x22e   :  { %v299_v51 = vsub.f32 %v1533_v19, %v291_v49 }
 0x230   :  { %v1621_v52 = vpop.eup %1188  ;;  %v304_v53 = vmul.f32 1.442695, %v299_v51  ;;  %485 = vadd.xlane.f32.xlu2 %v484_v55 }
 0x231   :  { %v310_v56 = vsel %vm285_vm2, %v1621_v52, 0.0 }
 0x232   :  { %1190 = vpow2.f32 %v304_v53  ;;  %311 = vadd.xlane.f32.xlu0 %v310_v56 }
 0x237   :  { %v465_v11 = vpop.xlane.xlu0 %464 }
 0x238   :  { %v1625_v57 = vpop.eup %1190  ;;  %v473_v58 = vsub.f32 %v1540_v29, %v465_v11 }
 0x239   :  { %v313_v19 = vsel %vm285_vm2, %v1625_v57, 0.0 }
 0x23a   :  { %v478_v59 = vmul.f32 1.442695, %v473_v58  ;;  %314 = vadd.xlane.f32.xlu1 %v313_v19 }
 0x23c   :  { %1192 = vpow2.f32 %v478_v59 }
 0x23f   :  { %v655_v63 = vpop.xlane.xlu0 %654 }
 0x240   :  { %v663_v0 = vsub.f32 %v1548_v41, %v655_v63  ;;  %v658_v1 = vpop.xlane.xlu1 %657  ;;  %v848_v41 = vsub.f32 %v1522_v7, %v838_v43 }
 0x241   :  { %v664_v3 = vsub.f32 %v1553_v46, %v658_v1  ;;  %v468_v4 = vpop.xlane.xlu2 %467 }
 0x242   :  { %v1632_v5 = vpop.eup %1192  ;;  %v668_v6 = vmul.f32 1.442695, %v663_v0  ;;  %v474_v9 = vsub.f32 %v1558_v50, %v468_v4  ;;  %v852_v18 = vmul.f32 1.442695, %v848_v41 }
 0x243   :  { %v670_v10 = vmul.f32 1.442695, %v664_v3  ;;  %v487_v29 = vsel %vm285_vm2, %v1632_v5, 0.0 }
 0x244   :  { %1194 = vpow2.f32 %v668_v6  ;;  %488 = vadd.xlane.f32.xlu0 %v487_v29  ;;  %v480_v12 = vmul.f32 1.442695, %v474_v9 }
 0x245   :  { %1196 = vpow2.f32 %v670_v10 }
 0x246   :  { %1198 = vpow2.f32 %v480_v12 }
 0x247   :  { %v841_v13 = vpop.xlane.xlu0 %840  ;;  %1200 = vpow2.f32 %v852_v18 }
 0x248   :  { %v849_v7 = vsub.f32 %v1566_v60, %v841_v13 }
 0x24a   :  { %v1637_v14 = vpop.eup %1194  ;;  %v1640_v46 = vpop.xlane.xlu2 %296  ;;  %v854_v26 = vmul.f32 1.442695, %v849_v7 }
 0x24b   :  { %v1642_v16 = vpop.eup %1196  ;;  %v677_v50 = vsel %vm285_vm2, %v1637_v14, 0.0  ;;  %v301_v59 = vsub.f32 %v1574_v2, %v1640_v46 }
 0x24c   :  { %678 = vadd.xlane.f32.xlu2 %v677_v50  ;;  %v680_v17 = vsel %vm285_vm2, %v1642_v16, 0.0  ;;  %v1648_v21 = vpop.eup %1198 }
 0x24d   :  { %681 = vadd.xlane.f32.xlu0 %v680_v17  ;;  %v490_v54 = vsel %vm285_vm2, %v1648_v21, 0.0  ;;  %v1654_v27 = vpop.eup %1200  ;;  %v308_v0 = vmul.f32 1.442695, %v301_v59 }
 0x24e   :  { %v860_v60 = vsel %vm285_vm2, %v1654_v27, 0.0 }
 0x24f   :  { %v294_v20 = vpop.xlane.xlu0 %293 }
 0x250   :  { %v300_v22 = vsub.f32 %v1580_v15, %v294_v20 }
 0x252   :  { %v306_v48 = vmul.f32 1.442695, %v300_v22  ;;  %v471_v24 = vpop.xlane.xlu2 %470 }
 0x253   :  { %v475_v62 = vsub.f32 %v1586_v23, %v471_v24 }
 0x254   :  { %1202 = vpow2.f32 %v306_v48  ;;  %491 = vadd.xlane.f32.xlu2 %v490_v54 }
 0x255   :  { %1204 = vpow2.f32 %v854_v26  ;;  %v482_v32 = vmul.f32 1.442695, %v475_v62 }
 0x257   :  { %1206 = vpow2.f32 %v482_v32 }
 0x258   :  { %v1169_v42 = vpop.permute.xlu1 %1168 }
 0x259   :  { %v1170_v61 = vunpack.i.l.bf16 %v1169_v42  ;;  %v1171_v49 = vunpack.i.h.bf16 %v1169_v42 }
 0x25a   :  { %v1656_v28 = vpop.eup %1202  ;;  %v661_v31 = vpop.xlane.xlu2 %660 }
 0x25b   :  { %v316_v15 = vsel %vm285_vm2, %v1656_v28, 0.0  ;;  %v1663_v33 = vpop.eup %1204  ;;  %v665_v3 = vsub.f32 %v1592_v25, %v661_v31 }
 0x25c   :  { %317 = vadd.xlane.f32.xlu1 %v316_v15  ;;  %861 = vadd.xlane.f32.xlu2 %v860_v60  ;;  %v863_v23 = vsel %vm285_vm2, %v1663_v33, 0.0 }
 0x25d   :  { %v1668_v45 = vpop.eup %1206  ;;  %v672_v6 = vmul.f32 1.442695, %v665_v3 }
 0x262   :  { %v1159_v34 = vpop.permute.xlu0 %1158  ;;  %v847_v36 = vpop.xlane.xlu2 %846 }
 0x263   :  { %v851_v38 = vsub.f32 %v1599_v30, %v847_v36  ;;  %v1160_v40 = vunpack.i.l.bf16 %v1159_v34  ;;  %v1161_v44 = vunpack.i.h.bf16 %v1159_v34  ;;  %v493_v30 = vsel %vm285_vm2, %v1668_v45, 0.0 }
 0x264   :  { %864 = vadd.xlane.f32.xlu1 %v863_v23 }
 0x265   :  { %v858_v43 = vmul.f32 1.442695, %v851_v38  ;;  %782 = vmatpush.msrb.mxu3 %v1160_v40 }
 0x267   :  { %1208 = vpow2.f32 %v858_v43  ;;  %783 = vmatpush.msrb.mxu3 %v1161_v44 }
 0x269   :  { %784 = vmatpush.msrb.mxu3 %v1170_v61 }
 0x26a   :  { %v1164_v51 = vpop.permute.xlu2 %1163 }
 0x26b   :  { %v1165_v55 = vunpack.i.l.bf16 %v1164_v51  ;;  %785 = vmatpush.msrb.mxu3 %v1171_v49  ;;  %v1166_v56 = vunpack.i.h.bf16 %v1164_v51 }
 0x26c   :  { %494 = vadd.xlane.f32.xlu1 %v493_v30 }
 0x26d   :  { %v1672_v53 = vpop.eup %1208  ;;  %598 = vmatpush.msra.mxu2 %v1165_v55 }
 0x26e   :  { %v869_v11 = vsel %vm285_vm2, %v1672_v53, 0.0 }
 0x26f   :  { %870 = vadd.xlane.f32.xlu2 %v869_v11  ;;  %599 = vmatpush.msra.mxu2 %v1166_v56 }
 0x285   :  { %1178 = vrot.lane.b32.xlu1 %v1497_v37, %s1421_s26 }
 0x28d   :  { %v844_v58 = vpop.xlane.xlu0 %843 }
 0x28e   :  { %v850_v19 = vsub.f32 %v1571_v8, %v844_v58 }
 0x290   :  { %v856_v63 = vmul.f32 1.442695, %v850_v19 }
 0x292   :  { %1210 = vpow2.f32 %v856_v63 }
 0x293   :  { %1212 = vpow2.f32 %v308_v0 }
 0x294   :  { %1214 = vpow2.f32 %v672_v6 }
 0x296   :  { %v1690_v9 = vpop.xlane.xlu1 %675 }
 0x298   :  { %v1681_v1 = vpop.eup %1210 }
 0x299   :  { %v866_v4 = vsel %vm285_vm2, %v1681_v1, 0.0  ;;  %v1686_v37 = vpop.eup %1212 }
 0x29a   :  { %867 = vadd.xlane.f32.xlu0 %v866_v4  ;;  %v319_v8 = vsel %vm285_vm2, %v1686_v37, 0.0  ;;  %v1692_v29 = vpop.eup %1214 }
 0x29b   :  { %v683_v25 = vsel %vm285_vm2, %v1692_v29, 0.0 }
 0x2a2   :  { %320 = vadd.xlane.f32.xlu0 %v319_v8 }
 0x2a3   :  { %v486_v2 = vpop.xlane.xlu2 %485 }
 0x2a4   :  { %1216 = vrcp.f32 %v486_v2  ;;  %v507_v18 = vand.u32 2147483648, %v486_v2  ;;  %v505_v22 = vand.u32 2147483647, %v486_v2  ;;  %vm501_vm7 = vweird.f32 %v486_v2 }
 0x2a5   :  { %v312_v10 = vpop.xlane.xlu0 %311 }
 0x2a6   :  { %1218 = vrcp.f32 %v312_v10  ;;  %v333_v48 = vand.u32 2147483648, %v312_v10  ;;  %v331_v26 = vand.u32 2147483647, %v312_v10  ;;  %v508_v62 = vor.u32 1.1754944e-38, %v507_v18 }
 0x2a7   :  { %vm506_vm10 = vcmp.eq.f32.partialorder %v505_v22, 8.507059e+37  ;;  %vm327_vm11 = vweird.f32 %v312_v10 }
 0x2a8   :  { %v334_v34 = vor.u32 1.1754944e-38, %v333_v48  ;;  %vm332_vm13 = vcmp.eq.f32.partialorder %v331_v26, 8.507059e+37 }
 0x2aa   :  { %v1217_v12 = vpop.eup %1216  ;;  %684 = vadd.xlane.f32.xlu0 %v683_v25 }
 0x2ab   :  { %v497_v13 = vmul.f32 %v1217_v12, %v486_v2  ;;  %vm502_vm6 = vweird.f32 %v1217_v12 }
 0x2ac   :  { %v1219_v41 = vpop.eup %1218  ;;  %vm503_vm9 = vmor %vm501_vm7, %vm502_vm6 }
 0x2ad   :  { %v498_v46 = vsub.f32 1.0, %v497_v13  ;;  %v323_v50 = vmul.f32 %v1219_v41, %v312_v10  ;;  %v315_v17 = vpop.xlane.xlu1 %314  ;;  %vm328_vm8 = vweird.f32 %v1219_v41 }
 0x2ae   :  { %1220 = vrcp.f32 %v315_v17  ;;  %vm329_vm12 = vmor %vm327_vm11, %vm328_vm8  ;;  %v348_v61 = vand.u32 2147483648, %v315_v17  ;;  %v346_v51 = vand.u32 2147483647, %v315_v17  ;;  %vm342_vm15 = vweird.f32 %v315_v17 }
 0x2af   :  { %v499_v20 = vmul.f32 %v1217_v12, %v498_v46  ;;  %v324_v7 = vsub.f32 1.0, %v323_v50 }
 0x2b0   :  { %v349_v30 = vor.u32 1.1754944e-38, %v348_v61  ;;  %vm347_vm1 = vcmp.eq.f32.partialorder %v346_v51, 8.507059e+37 }
 0x2b1   :  { %v500_v24 = vadd.f32 %v1217_v12, %v499_v20  ;;  %v325_v54 = vmul.f32 %v1219_v41, %v324_v7 }
 0x2b3   :  { %v504_v31 = vsel %vm503_vm9, %v1217_v12, %v500_v24  ;;  %v326_v15 = vadd.f32 %v1219_v41, %v325_v54 }
 0x2b4   :  { %v1221_v60 = vpop.eup %1220  ;;  %v509_v32 = vsel %vm506_vm10, %v508_v62, %v504_v31 }
 0x2b5   :  { %v338_v36 = vmul.f32 %v1221_v60, %v315_v17  ;;  %v510_v38 = vmul.f32 %v1616_v47, %v509_v32  ;;  %v330_v23 = vsel %vm329_vm12, %v1219_v41, %v326_v15  ;;  %vm343_vm14 = vweird.f32 %v1221_v60 }
 0x2b6   :  { %v335_v40 = vsel %vm332_vm13, %v334_v34, %v330_v23  ;;  %vm344_vm0 = vmor %vm342_vm15, %vm343_vm14 }
 0x2b7   :  { %v339_v42 = vsub.f32 1.0, %v338_v36  ;;  %v489_v43 = vpop.xlane.xlu0 %488  ;;  %1104 = vmatmul.msk.f32.vlgmr.msra.gmra.mxu2 %vm285_vm2, %v510_v38  ;;  %v336_v44 = vmul.f32 %v1621_v52, %v335_v40 }
 0x2b8   :  { %1222 = vrcp.f32 %v489_v43  ;;  %v522_v0 = vand.u32 2147483648, %v489_v43  ;;  %v520_v3 = vand.u32 2147483647, %v489_v43  ;;  %vm516_vm4 = vweird.f32 %v489_v43 }
 0x2b9   :  { %v340_v49 = vmul.f32 %v1221_v60, %v339_v42  ;;  %1100 = vmatmul.msk.f32.vlgmr.msra.gmra.mxu3 %vm285_vm2, %v336_v44 }
 0x2ba   :  { %v523_v6 = vor.u32 1.1754944e-38, %v522_v0  ;;  %vm521_vm6 = vcmp.eq.f32.partialorder %v520_v3, 8.507059e+37 }
 0x2bb   :  { %v341_v55 = vadd.f32 %v1221_v60, %v340_v49 }
 0x2bd   :  { %v345_v47 = vsel %vm344_vm0, %v1221_v60, %v341_v55 }
 0x2be   :  { %v1223_v56 = vpop.eup %1222  ;;  %1173 = vrot.lane.b32.xlu0 %v1493_v35, %s1421_s26  ;;  %v350_v11 = vsel %vm347_vm1, %v349_v30, %v345_v47 }
 0x2bf   :  { %v512_v58 = vmul.f32 %v1223_v56, %v489_v43  ;;  %v1702_v52 = vpop.xlane.xlu2 %678  ;;  %v351_v19 = vmul.f32 %v1625_v57, %v350_v11  ;;  %vm517_vm3 = vweird.f32 %v1223_v56 }
 0x2c0   :  { %vm518_vm5 = vmor %vm516_vm4, %vm517_vm3 }
 0x2c1   :  { %v513_v59 = vsub.f32 1.0, %v512_v58  ;;  %1101 = vmatmul.msk.f32.gmra.mxu3 %vm285_vm2, %v351_v19 }
 0x2c3   :  { %v514_v63 = vmul.f32 %v1223_v56, %v513_v59 }
 0x2c5   :  { %v515_v4 = vadd.f32 %v1223_v56, %v514_v63 }
 0x2c7   :  { %v492_v8 = vpop.xlane.xlu2 %491  ;;  %v519_v2 = vsel %vm518_vm5, %v1223_v56, %v515_v4 }
 0x2c8   :  { %1224 = vrcp.f32 %v492_v8  ;;  %v524_v35 = vsel %vm521_vm6, %v523_v6, %v519_v2  ;;  %v537_v46 = vand.u32 2147483648, %v492_v8  ;;  %v535_v50 = vand.u32 2147483647, %v492_v8 }
 0x2c9   :  { %v525_v10 = vmul.f32 %v1632_v5, %v524_v35  ;;  %vm531_vm8 = vweird.f32 %v492_v8 }
 0x2ca   :  { %v538_v20 = vor.u32 1.1754944e-38, %v537_v46  ;;  %vm536_vm10 = vcmp.eq.f32.partialorder %v535_v50, 8.507059e+37  ;;  %v697_v50 = vand.u32 2147483648, %v1690_v9 }
 0x2cb   :  { %1105 = vmatmul.msk.f32.gmra.mxu2 %vm285_vm2, %v525_v10 }
 0x2ce   :  { %v1225_v57 = vpop.eup %1224 }
 0x2cf   :  { %v527_v25 = vmul.f32 %v1225_v57, %v492_v8  ;;  %v318_v12 = vpop.xlane.xlu1 %317  ;;  %vm532_vm7 = vweird.f32 %v1225_v57  ;;  %v1723_v19 = vpop.xlane.xlu2 %861 }
 0x2d0   :  { %1226 = vrcp.f32 %v318_v12  ;;  %vm533_vm9 = vmor %vm531_vm8, %vm532_vm7  ;;  %v363_v54 = vand.u32 2147483648, %v318_v12  ;;  %v361_v31 = vand.u32 2147483647, %v318_v12  ;;  %vm357_vm12 = vweird.f32 %v318_v12 }
 0x2d1   :  { %v528_v13 = vsub.f32 1.0, %v527_v25  ;;  %vm691_vm7 = vweird.f32 %v1690_v9 }
 0x2d2   :  { %v364_v60 = vor.u32 1.1754944e-38, %v363_v54  ;;  %vm362_vm14 = vcmp.eq.f32.partialorder %v361_v31, 8.507059e+37 }
 0x2d3   :  { %v529_v41 = vmul.f32 %v1225_v57, %v528_v13 }
 0x2d5   :  { %v530_v17 = vadd.f32 %v1225_v57, %v529_v41 }
 0x2d6   :  { %v1227_v18 = vpop.eup %1226 }
 0x2d7   :  { %v353_v22 = vmul.f32 %v1227_v18, %v318_v12  ;;  %v1708_v7 = vpop.xlane.xlu1 %864  ;;  %v534_v5 = vsel %vm533_vm9, %v1225_v57, %v530_v17  ;;  %vm358_vm11 = vweird.f32 %v1227_v18 }
 0x2d8   :  { %v539_v24 = vsel %vm536_vm10, %v538_v20, %v534_v5  ;;  %vm359_vm13 = vmor %vm357_vm12, %vm358_vm11  ;;  %v695_v20 = vand.u32 2147483647, %v1690_v9 }
 0x2d9   :  { %v354_v48 = vsub.f32 1.0, %v353_v22  ;;  %v540_v26 = vmul.f32 %v1648_v21, %v539_v24 }
 0x2da   :  { %vm696_vm11 = vcmp.eq.f32.partialorder %v695_v20, 8.507059e+37 }
 0x2db   :  { %v355_v62 = vmul.f32 %v1227_v18, %v354_v48  ;;  %1106 = vmatmul.msk.f32.gmra.mxu2 %vm285_vm2, %v540_v26 }
 0x2dd   :  { %v356_v15 = vadd.f32 %v1227_v18, %v355_v62 }
 0x2df   :  { %v495_v32 = vpop.xlane.xlu1 %494  ;;  %v360_v34 = vsel %vm359_vm13, %v1227_v18, %v356_v15  ;;  %vm706_vm13 = vweird.f32 %v1702_v52 }
 0x2e0   :  { %1228 = vrcp.f32 %v495_v32  ;;  %v365_v36 = vsel %vm362_vm14, %v364_v60, %v360_v34  ;;  %v552_v42 = vand.u32 2147483648, %v495_v32  ;;  %v550_v44 = vand.u32 2147483647, %v495_v32 }
 0x2e1   :  { %v366_v38 = vmul.f32 %v1656_v28, %v365_v36  ;;  %vm546_vm0 = vweird.f32 %v495_v32  ;;  %v1716_v28 = vpop.xlane.xlu0 %681  ;;  %1230 = vrcp.f32 %v1690_v9  ;;  %v698_v60 = vor.u32 1.1754944e-38, %v697_v50  ;;  %v1183_v50 = vld [vmem:[%s1928_s6] ss:$0 sm:$0xff]  ;;  %s1422_s6 = smov [#allocation11]  }
 0x2e2   :  { %v553_v49 = vor.u32 1.1754944e-38, %v552_v42  ;;  %vm551_vm3 = vcmp.eq.f32.partialorder %v550_v44, 8.507059e+37  ;;  %1232 = vrcp.f32 %v1702_v52  ;;  %v1734_v8 = vpop.xlane.xlu2 %870  ;;  %vm721_vm14 = vweird.f32 %v1716_v28  ;;  %s1083_s29 = sshll.u32 %s1422_s6, 4  ;;  %s1084_s29 = int_to_ptr.vmem [resolvable:$true] %s1083_s29 }
 0x2e3   :  { %1102 = vmatmul.msk.f32.gmra.mxu3 %vm285_vm2, %v366_v38 }
 0x2e6   :  { %v1229_v23 = vpop.eup %1228 }
 0x2e7   :  { %v542_v21 = vmul.f32 %v1229_v23, %v495_v32  ;;  %vm547_vm15 = vweird.f32 %v1229_v23  ;;  %v1231_v56 = vpop.eup %1230 }
 0x2e8   :  { %vm548_vm1 = vmor %vm546_vm0, %vm547_vm15  ;;  %v687_v58 = vmul.f32 %v1231_v56, %v1690_v9  ;;  %v1727_v59 = vpop.eup %1232  ;;  %vm692_vm4 = vweird.f32 %v1231_v56 }
 0x2e9   :  { %v543_v40 = vsub.f32 1.0, %v542_v21  ;;  %v702_v4 = vmul.f32 %v1727_v59, %v1702_v52  ;;  %vm1752_vm9 = vmor %vm691_vm7, %vm692_vm4  ;;  %vm707_vm12 = vweird.f32 %v1727_v59 }
 0x2ea   :  { %vm1782_vm15 = vmor %vm706_vm13, %vm707_vm12 }
 0x2eb   :  { %v544_v43 = vmul.f32 %v1229_v23, %v543_v40  ;;  %v703_v41 = vsub.f32 1.0, %v702_v4  ;;  %v710_v40 = vand.u32 2147483647, %v1702_v52 }
 0x2ed   :  { %v545_v61 = vadd.f32 %v1229_v23, %v544_v43  ;;  %v704_v26 = vmul.f32 %v1727_v59, %v703_v41  ;;  %vm1786_vm0 = vcmp.eq.f32.partialorder %v710_v40, 8.507059e+37 }
 0x2ef   :  { %v549_v51 = vsel %vm548_vm1, %v1229_v23, %v545_v61  ;;  %v712_v23 = vand.u32 2147483648, %v1702_v52 }
 0x2f0   :  { %v554_v55 = vsel %vm551_vm3, %v553_v49, %v549_v51 }
 0x2f1   :  { %v555_v30 = vmul.f32 %v1668_v45, %v554_v55  ;;  %v688_v45 = vsub.f32 1.0, %v687_v58  ;;  %v713_v55 = vor.u32 1.1754944e-38, %v712_v23  ;;  %v896_v23 = vand.u32 2147483647, %v1708_v7 }
 0x2f3   :  { %1107 = vmatmul.msk.f32.gmra.mxu2 %vm285_vm2, %v555_v30  ;;  %v689_v3 = vmul.f32 %v1231_v56, %v688_v45  ;;  %v883_v45 = vand.u32 2147483648, %v1723_v19 }
 0x2f5   :  { %v690_v13 = vadd.f32 %v1231_v56, %v689_v3  ;;  %v881_v3 = vand.u32 2147483647, %v1723_v19 }
 0x2f7   :  { %v694_v9 = vsel %vm1752_vm9, %v1231_v56, %v690_v13  ;;  %v727_v13 = vand.u32 2147483648, %v1716_v28 }
 0x2f8   :  { %v699_v21 = vsel %vm696_vm11, %v698_v60, %v694_v9 }
 0x2f9   :  { %v700_v51 = vmul.f32 %v1611_v39, %v699_v21 }
 0x30d   :  { %v1719_v47 = vpop.xlane.xlu0 %867 }
 0x30e   :  { %v913_v4 = vand.u32 2147483648, %v1719_v47  ;;  %vm907_vm7 = vweird.f32 %v1719_v47 }
 0x315   :  { %v321_v11 = vpop.xlane.xlu0 %320 }
 0x316   :  { %1234 = vrcp.f32 %v321_v11  ;;  %v378_v10 = vand.u32 2147483648, %v321_v11  ;;  %v376_v12 = vand.u32 2147483647, %v321_v11  ;;  %vm372_vm6 = vweird.f32 %v321_v11 }
 0x317   :  { %1236 = vrcp.f32 %v1723_v19 }
 0x318   :  { %1238 = vrcp.f32 %v1719_v47  ;;  %v379_v5 = vor.u32 1.1754944e-38, %v378_v10  ;;  %vm377_vm10 = vcmp.eq.f32.partialorder %v376_v12, 8.507059e+37 }
 0x319   :  { %1240 = vrcp.f32 %v1716_v28 }
 0x31a   :  { %1242 = vrcp.f32 %v1708_v7 }
 0x31b   :  { %1244 = vrcp.f32 %v1734_v8 }
 0x31c   :  { %v1235_v63 = vpop.eup %1234 }
 0x31d   :  { %v368_v0 = vmul.f32 %v1235_v63, %v321_v11  ;;  %v1732_v6 = vpop.eup %1236  ;;  %vm373_vm5 = vweird.f32 %v1235_v63  ;;  %v1756_v24 = vpop.xlane.xlu0 %684 }
 0x31e   :  { %v1736_v35 = vpop.eup %1238  ;;  %v873_v46 = vmul.f32 %v1732_v6, %v1723_v19  ;;  %vm374_vm8 = vmor %vm372_vm6, %vm373_vm5  ;;  %1246 = vrcp.f32 %v1756_v24  ;;  %vm878_vm3 = vweird.f32 %v1732_v6  ;;  %vm877_vm5 = vweird.f32 %v1723_v19 }
 0x31f   :  { %v369_v2 = vsub.f32 1.0, %v368_v0  ;;  %v1738_v57 = vpop.eup %1240  ;;  %v903_v17 = vmul.f32 %v1736_v35, %v1719_v47  ;;  %vm908_vm4 = vweird.f32 %v1736_v35  ;;  %vm1807_vm6 = vmor %vm877_vm5, %vm878_vm3  ;;  %v740_v56 = vand.u32 2147483647, %v1756_v24 }
 0x320   :  { %v717_v22 = vmul.f32 %v1738_v57, %v1716_v28  ;;  %v874_v62 = vsub.f32 1.0, %v873_v46  ;;  %v1761_v15 = vpop.eup %1242  ;;  %vm722_vm1 = vweird.f32 %v1738_v57  ;;  %v1179_v46 = vpop.permute.xlu1 %1178 }
 0x321   :  { %v370_v25 = vmul.f32 %v1235_v63, %v369_v2  ;;  %v904_v32 = vsub.f32 1.0, %v903_v17  ;;  %v1764_v36 = vpop.eup %1244  ;;  %v888_v43 = vmul.f32 %v1761_v15, %v1708_v7  ;;  %vm1837_vm9 = vmor %vm721_vm14, %vm722_vm1  ;;  %vm893_vm12 = vweird.f32 %v1761_v15 }
 0x322   :  { %v718_v38 = vsub.f32 1.0, %v717_v22  ;;  %v875_v42 = vmul.f32 %v1732_v6, %v874_v62  ;;  %v918_v44 = vmul.f32 %v1764_v36, %v1734_v8  ;;  %vm923_vm13 = vweird.f32 %v1764_v36 }
 0x323   :  { %v371_v18 = vadd.f32 %v1235_v63, %v370_v25  ;;  %v905_v61 = vmul.f32 %v1736_v35, %v904_v32  ;;  %v889_v39 = vsub.f32 1.0, %v888_v43  ;;  %vm892_vm14 = vweird.f32 %v1708_v7 }
 0x324   :  { %v719_v49 = vmul.f32 %v1738_v57, %v718_v38  ;;  %v1791_v11 = vpop.eup %1246  ;;  %v876_v52 = vadd.f32 %v1732_v6, %v875_v42  ;;  %v928_v38 = vand.u32 2147483648, %v1734_v8  ;;  %v926_v43 = vand.u32 2147483647, %v1734_v8 }
 0x325   :  { %v375_v54 = vsel %vm374_vm8, %v1235_v63, %v371_v18  ;;  %v919_v63 = vsub.f32 1.0, %v918_v44  ;;  %v906_v0 = vadd.f32 %v1736_v35, %v905_v61  ;;  %v732_v12 = vmul.f32 %v1791_v11, %v1756_v24  ;;  %vm1820_vm8 = vmor %vm907_vm7, %vm908_vm4 }
 0x326   :  { %v380_v31 = vsel %vm377_vm10, %v379_v5, %v375_v54  ;;  %v1805_v10 = vadd.f32 %v1738_v57, %v719_v49  ;;  %v890_v41 = vmul.f32 %v1761_v15, %v889_v39  ;;  %v880_v17 = vsel %vm1807_vm6, %v1732_v6, %v876_v52 }
 0x327   :  { %v381_v34 = vmul.f32 %v1686_v37, %v380_v31  ;;  %v705_v37 = vadd.f32 %v1727_v59, %v704_v26  ;;  %v884_v18 = vor.u32 1.1754944e-38, %v883_v45  ;;  %v920_v20 = vmul.f32 %v1764_v36, %v919_v63 }
 0x328   :  { %v910_v5 = vsel %vm1820_vm8, %v1736_v35, %v906_v0  ;;  %vm882_vm10 = vcmp.eq.f32.partialorder %v881_v3, 8.507059e+37  ;;  %v914_v6 = vor.u32 1.1754944e-38, %v913_v4  ;;  %v724_v54 = vsel %vm1837_vm9, %v1738_v57, %v1805_v10 }
 0x329   :  { %1103 = vmatmul.msk.f32.gmra.mxu3 %vm285_vm2, %v381_v34  ;;  %v709_v58 = vsel %vm1782_vm15, %v1727_v59, %v705_v37  ;;  %v911_v59 = vand.u32 2147483647, %v1719_v47  ;;  %v725_v26 = vand.u32 2147483647, %v1716_v28  ;;  %v733_v62 = vsub.f32 1.0, %v732_v12 }
 0x32a   :  { %v714_v47 = vsel %vm1786_vm0, %v713_v55, %v709_v58  ;;  %v1180_v35 = vunpack.i.l.bf16 %v1179_v46  ;;  %v885_v31 = vsel %vm882_vm10, %v884_v18, %v880_v17  ;;  %v891_v32 = vadd.f32 %v1761_v15, %v890_v41  ;;  %vm1862_vm0 = vmor %vm892_vm14, %vm893_vm12 }
 0x32b   :  { %vm912_vm11 = vcmp.eq.f32.partialorder %v911_v59, 8.507059e+37  ;;  %v715_v9 = vmul.f32 %v1637_v14, %v714_v47  ;;  %v898_v34 = vand.u32 2147483648, %v1708_v7  ;;  %v1181_v57 = vunpack.i.h.bf16 %v1179_v46 }
 0x32c   :  { %v915_v60 = vsel %vm912_vm11, %v914_v6, %v910_v5  ;;  %v921_v28 = vadd.f32 %v1764_v36, %v920_v20  ;;  %v886_v14 = vmul.f32 %v1654_v27, %v885_v31  ;;  %vm922_vm15 = vweird.f32 %v1734_v8 }
 0x32d   :  { %v734_v21 = vmul.f32 %v1791_v11, %v733_v62  ;;  %v916_v40 = vmul.f32 %v1681_v1, %v915_v60  ;;  %v728_v27 = vor.u32 1.1754944e-38, %v727_v13  ;;  %v895_v37 = vsel %vm1862_vm0, %v1761_v15, %v891_v32  ;;  %vm924_vm1 = vmor %vm922_vm15, %vm923_vm13 }
 0x32e   :  { %v899_v1 = vor.u32 1.1754944e-38, %v898_v34  ;;  %vm726_vm3 = vcmp.eq.f32.partialorder %v725_v26, 8.507059e+37  ;;  %v925_v8 = vsel %vm924_vm1, %v1764_v36, %v921_v28  ;;  %v929_v44 = vor.u32 1.1754944e-38, %v928_v38 }
 0x32f   :  { %v729_v61 = vsel %vm726_vm3, %v728_v27, %v724_v54  ;;  %vm897_vm4 = vcmp.eq.f32.partialorder %v896_v23, 8.507059e+37  ;;  %vm927_vm5 = vcmp.eq.f32.partialorder %v926_v43, 8.507059e+37  ;;  %vm737_vm6 = vweird.f32 %v1791_v11 }
 0x330   :  { %v1174_v2 = vpop.permute.xlu0 %1173  ;;  %v900_v49 = vsel %vm897_vm4, %v899_v1, %v895_v37  ;;  %v742_v15 = vand.u32 2147483648, %v1756_v24  ;;  %v930_v55 = vsel %vm927_vm5, %v929_v44, %v925_v8  ;;  %vm736_vm7 = vweird.f32 %v1756_v24 }
 0x331   :  { %1108 = vmatmul.msk.f32.vlgmr.msrb.gmra.mxu3 %vm285_vm2, %v700_v51  ;;  %v1175_v19 = vunpack.i.l.bf16 %v1174_v2  ;;  %v1176_v22 = vunpack.i.h.bf16 %v1174_v2  ;;  %v735_v51 = vadd.f32 %v1791_v11, %v734_v21  ;;  %v730_v30 = vmul.f32 %v1642_v16, %v729_v61  ;;  %vm738_vm8 = vmor %vm736_vm7, %vm737_vm6 }
 0x332   :  { %v901_v36 = vmul.f32 %v1663_v33, %v900_v49  ;;  %v931_v52 = vmul.f32 %v1672_v53, %v930_v55  ;;  %v743_v58 = vor.u32 1.1754944e-38, %v742_v15  ;;  %vm741_vm9 = vcmp.eq.f32.partialorder %v740_v56, 8.507059e+37 }
 0x333   :  { %968 = vmatpush.msrb.mxu0 %v1175_v19  ;;  %1120 = vmatpush.msrb.mxu1 %v1175_v19  ;;  %v739_v39 = vsel %vm738_vm8, %v1791_v11, %v735_v51  ;;  %vm1037_vm10 = vcmask 523264   ;;  %vm1042_vm11 = vcmask 785408  }
 0x334   :  { %v744_v45 = vsel %vm741_vm9, %v743_v58, %v739_v39 }
 0x335   :  { %969 = vmatpush.msrb.mxu0 %v1176_v22  ;;  %1121 = vmatpush.msrb.mxu1 %v1176_v22  ;;  %v745_v16 = vmul.f32 %v1692_v29, %v744_v45 }
 0x337   :  { %970 = vmatpush.msrb.mxu0 %v1180_v35  ;;  %1122 = vmatpush.msrb.mxu1 %v1180_v35 }
 0x339   :  { %1109 = vmatmul.msk.f32.gmra.mxu3 %vm285_vm2, %v715_v9  ;;  %971 = vmatpush.msrb.mxu0 %v1181_v57 }
 0x33a   :  { %1123 = vmatpush.msrb.mxu1 %v1181_v57  ;;  %v601_v7 = vpop.f32.mrf.mxu2  ;;  %1112 = vmatmul.msk.f32.vlgmr.msrb.gmra.mxu0 %vm285_vm2, %v886_v14 }
 0x33b   :  { %1114 = vmatmul.msk.f32.vlgmr.msrb.gmra.mxu1 %vm285_vm2, %v916_v40  ;;  %989 = vrot.lane.b32.xlu2 %v601_v7, %s1421_s26 }
 0x33c   :  { %v411_v53 = vpop.f32.mrf.mxu3 }
 0x341   :  { %1110 = vmatmul.msk.f32.gmra.mxu3 %vm285_vm2, %v730_v30 }
 0x342   :  { %1113 = vmatmul.msk.f32.gmra.mxu0 %vm285_vm2, %v901_v36 }
 0x343   :  { %1115 = vmatmul.msk.f32.gmra.mxu1 %vm285_vm2, %v931_v52 }
 0x344   :  { %v414_v11 = vpop.f32.mrf.mxu3 }
 0x349   :  { %1111 = vmatmul.msk.f32.gmra.mxu3 %vm285_vm2, %v745_v16 }
 0x34e   :  { %v604_v24 = vpop.f32.mrf.mxu2 }
 0x34f   :  { %991 = vrot.lane.b32.xlu0 %v604_v24, %s1421_s26 }
 0x35e   :  { %v607_v33 = vpop.f32.mrf.mxu2 }
 0x366   :  { %v417_v0 = vpop.f32.mrf.mxu3 }
 0x376   :  { %v610_v63 = vpop.f32.mrf.mxu2 }
 0x377   :  { %995 = vrot.lane.b32.xlu2 %v610_v63, %s1421_s26 }
 0x395   :  { %v990_v41 = vpop.permute.xlu2 %989 }
 0x396   :  { %v1033_v47 = vsel %vm285_vm2, %v411_v53, %v990_v41 }
 0x3ac   :  { %v420_v3 = vpop.f32.mrf.mxu3 }
 0x3b4   :  { %v787_v4 = vpop.f32.mrf.mxu3 }
 0x3b5   :  { %1005 = vrot.lane.b32.xlu0 %v787_v4, %s1420_s25 }
 0x3b7   :  { %v973_v2 = vpop.f32.mrf.mxu0 }
 0x3b8   :  { %1021 = vrot.lane.b32.xlu1 %v973_v2, %s1417_s5  ;;  %v979_v25 = vpop.f32.mrf.mxu1 }
 0x3bc   :  { %v790_v29 = vpop.f32.mrf.mxu3 }
 0x3bf   :  { %v976_v59 = vpop.f32.mrf.mxu0 }
 0x3c0   :  { %993 = vrot.lane.b32.xlu1 %v607_v33, %s1421_s26  ;;  %v982_v19 = vpop.f32.mrf.mxu1 }
 0x3c1   :  { %v992_v13 = vpop.permute.xlu0 %991 }
 0x3c2   :  { %v1034_v31 = vsel %vm285_vm2, %v414_v11, %v992_v13 }
 0x3c4   :  { %v793_v10 = vpop.f32.mrf.mxu3 }
 0x3c5   :  { %1009 = vrot.lane.b32.xlu2 %v793_v10, %s1420_s25 }
 0x3c8   :  { %1007 = vrot.lane.b32.xlu1 %v790_v29, %s1420_s25 }
 0x3cc   :  { %v796_v12 = vpop.f32.mrf.mxu3 }
 0x3cd   :  { %1011 = vrot.lane.b32.xlu0 %v796_v12, %s1420_s25  ;;  %1023 = vrot.lane.b32.xlu2 %v976_v59, %s1417_s5 }
 0x3d0   :  { %1027 = vrot.lane.b32.xlu1 %v982_v19, %s1417_s5 }
 0x3d1   :  { %v996_v17 = vpop.permute.xlu2 %995 }
 0x3d2   :  { %v1036_v14 = vsel %vm285_vm2, %v420_v3, %v996_v17 }
 0x3d5   :  { %1025 = vrot.lane.b32.xlu0 %v979_v25, %s1417_s5 }
 0x41f   :  { %v1010_v6 = vpop.permute.xlu2 %1009 }
 0x427   :  { %v1006_v46 = vpop.permute.xlu0 %1005  ;;  %v1024_v60 = vpop.permute.xlu2 %1023 }
 0x428   :  { %v1038_v18 = vsel %vm1037_vm10, %v1033_v47, %v1006_v46 }
 0x42a   :  { %v1022_v20 = vpop.permute.xlu1 %1021 }
 0x42b   :  { %v1043_v22 = vsel %vm1042_vm11, %v1038_v18, %v1022_v20 }
 0x42c   :  { %v1051_v5 = vadd.f32 %v1183_v50, %v1043_v22 }
 0x42e   :  { %v1059_v48 = vmul.f32 1.442695, %v1051_v5  ;;  %vm1055_vm12 = vcmp.gt.f32.partialorder %v1051_v5, 0.0 }
 0x430   :  { %1248 = vpow2.f32 %v1059_v48 }
 0x432   :  { %v994_v54 = vpop.permute.xlu1 %993 }
 0x433   :  { %v1035_v42 = vsel %vm285_vm2, %v417_v0, %v994_v54 }
 0x434   :  { %v1040_v1 = vsel %vm1037_vm10, %v1035_v42, %v1010_v6 }
 0x436   :  { %v1249_v26 = vpop.eup %1248 }
 0x437   :  { %v1116_v62 = vadd.f32 -1.0, %v1249_v26 }
 0x439   :  { %v1071_v35 = vsel %vm1055_vm12, %v1051_v5, %v1116_v62 }
 0x43a   :  { %1075 = vst [vmem:[#allocation11] sm:$0xff] %v1071_v35  ;;  %v1008_v9 = vpop.permute.xlu1 %1007 }
 0x43b   :  { %v1039_v32 = vsel %vm1037_vm10, %v1034_v31, %v1008_v9 }
 0x43c   :  { %v1044_v34 = vsel %vm1042_vm11, %v1039_v32, %v1024_v60 }
 0x43d   :  { %v1052_v57 = vadd.f32 %v1183_v50, %v1044_v34 }
 0x43f   :  { %v1061_v28 = vmul.f32 1.442695, %v1052_v57  ;;  %v1012_v38 = vpop.permute.xlu0 %1011  ;;  %vm1056_vm13 = vcmp.gt.f32.partialorder %v1052_v57, 0.0 }
 0x440   :  { %v1041_v23 = vsel %vm1037_vm10, %v1036_v14, %v1012_v38 }
 0x441   :  { %1250 = vpow2.f32 %v1061_v28 }
 0x442   :  { %v1028_v21 = vpop.permute.xlu1 %1027 }
 0x443   :  { %v1046_v40 = vsel %vm1042_vm11, %v1041_v23, %v1028_v21 }
 0x444   :  { %v1054_v43 = vadd.f32 %v1183_v50, %v1046_v40 }
 0x446   :  { %v1065_v27 = vmul.f32 1.442695, %v1054_v43  ;;  %vm1058_vm14 = vcmp.gt.f32.partialorder %v1054_v43, 0.0 }
 0x447   :  { %v1251_v7 = vpop.eup %1250  ;;  %v1026_v37 = vpop.permute.xlu0 %1025 }
 0x448   :  { %v1117_v8 = vadd.f32 -1.0, %v1251_v7  ;;  %1252 = vpow2.f32 %v1065_v27  ;;  %v1045_v44 = vsel %vm1042_vm11, %v1040_v1, %v1026_v37 }
 0x449   :  { %v1053_v61 = vadd.f32 %v1183_v50, %v1045_v44 }
 0x44a   :  { %v1072_v49 = vsel %vm1056_vm13, %v1052_v57, %v1117_v8 }
 0x44b   :  { %1076 = vst [vmem:[#allocation11 + $0x8] sm:$0xff] %v1072_v49  ;;  %v1063_v51 = vmul.f32 1.442695, %v1053_v61  ;;  %vm1057_vm2 = vcmp.gt.f32.partialorder %v1053_v61, 0.0 }
 0x44d   :  { %1254 = vpow2.f32 %v1063_v51 }
 0x44e   :  { %v1253_v15 = vpop.eup %1252 }
 0x44f   :  { %v1119_v55 = vadd.f32 -1.0, %v1253_v15 }
 0x451   :  { %v1074_v30 = vsel %vm1058_vm14, %v1054_v43, %v1119_v55 }
 0x452   :  { %1078 = vst [vmem:[#allocation11 + $0x18] sm:$0xff] %v1074_v30 }
 0x453   :  { %v1255_v56 = vpop.eup %1254 }
 0x454   :  { %v1118_v36 = vadd.f32 -1.0, %v1255_v56 }
 0x456   :  { %v1073_v52 = vsel %vm1057_vm2, %v1053_v61, %v1118_v36 }
 0x457   :  { %1077 = vst [vmem:[#allocation11 + $0x10] sm:$0xff] %v1073_v52 }
 0x458   :  { %1091 = dma.vmem_to_hbm [thread:$0]  %s1084_s29, 512, %s1086_s11, [#allocation4], %s1409_s9, %s1409_s9, %s1410_s10  }
 0x459   :  { %1406 = dma.done.wait [#allocation4], 512  }
 0x45a   :  { %1407 = vsyncadd [#allocation4], 4294966784 }
 0x45b   :  { %1096 = vsyncpa [#allocation3], 1 }
 0x45c   :  { %1097 = vsyncpa [#allocation6], 1 }
 0x45d   :  { %1098 = vsyncpa [#allocation9], 1 }
 0x45e   :  { %1099 = vsyncpa [#allocation4], 1 }

</bundles_post_ra>
